<compile_context>
chip_gen: v6e
topology: v6e:2x2x1
jax: 0.10.0
libtpu: 0.0.40
codegen_flags: <defaults>
</compile_context>

<pallas_src>
import functools

import jax
import jax.numpy as jnp
from jax import lax
from jax.experimental import pallas as pl
from jax.experimental.pallas import tpu as pltpu

_BN_EPS = 1e-5


def _round_up(n, m):
    return ((n + m - 1) // m) * m


# ---------------------------------------------------------------------------
# Fused whole-MLP kernel
# ---------------------------------------------------------------------------

def _mlp_fused_kernel(x_ref, w1_ref, b1_ref, wh_ref, bh_ref, wo_ref, bo_ref,
                      o_ref, h_ref, *, compute_dtype, num_rest):
    """o = ((leaky_relu chain over folded layers)(x)) @ W_out' + b_out'."""
    # Layer 1: (tile_b, 784) @ (784, H) -> (tile_b, H); BN/bias folded into W/b.
    z = jnp.dot(x_ref[...].astype(compute_dtype), w1_ref[...],
                preferred_element_type=jnp.float32) + b1_ref[...]
    h_ref[...] = jnp.where(z >= 0.0, z, 0.01 * z)          # LeakyReLU(0.01)

    # Layers 2..num_layers: stacked weights resident in VMEM, activation stays
    # in the h_ref scratch (never leaves VMEM between layers).
    def layer(l, carry):
        zz = jnp.dot(h_ref[...].astype(compute_dtype), wh_ref[l],
                     preferred_element_type=jnp.float32) + bh_ref[l]
        h_ref[...] = jnp.where(zz >= 0.0, zz, 0.01 * zz)
        return carry

    lax.fori_loop(0, num_rest, layer, 0)

    # Final projection, written as a lane-dense 128-wide slab (padded cols).
    zo = jnp.dot(h_ref[...].astype(compute_dtype), wo_ref[...],
                 preferred_element_type=jnp.float32) + bo_ref[...]
    o_ref[...] = zo.astype(o_ref.dtype)


# ---------------------------------------------------------------------------
# pallas_call wrapper (one launch for the whole network)
# ---------------------------------------------------------------------------

@functools.partial(jax.jit, static_argnames=("out_dim", "tile_b"))
def mlp_forward(x, fp, *, out_dim, tile_b=128):
    B, in_dim = x.shape
    H = fp["w1"].shape[1]
    out_pad = fp["wo"].shape[1]
    num_rest = fp["wh"].shape[0]
    compute_dtype = fp["w1"].dtype

    # Batch tile must be a multiple of 8 (f32 sublane); pad the batch so the
    # grid covers every row (no silent remainder truncation).
    tb = _round_up(min(tile_b, _round_up(B, 8)), 8)
    B_pad = _round_up(B, tb)
    x_p = jnp.pad(x, ((0, B_pad - B), (0, 0))).astype(compute_dtype)

    kernel = functools.partial(_mlp_fused_kernel,
                               compute_dtype=compute_dtype,
                               num_rest=num_rest)

    out = pl.pallas_call(
        kernel,
        out_shape=jax.ShapeDtypeStruct((B_pad, out_pad), jnp.float32),
        grid_spec=pltpu.PrefetchScalarGridSpec(
            num_scalar_prefetch=0,
            grid=(B_pad // tb,),
            in_specs=[
                pl.BlockSpec((tb, in_dim), lambda i: (i, 0)),         # x tile
                pl.BlockSpec((in_dim, H), lambda i: (0, 0)),          # W1'
                pl.BlockSpec((1, H), lambda i: (0, 0)),               # b1'
                pl.BlockSpec((num_rest, H, H), lambda i: (0, 0, 0)),  # stacked W'
                pl.BlockSpec((num_rest, 1, H), lambda i: (0, 0, 0)),  # stacked b'
                pl.BlockSpec((H, out_pad), lambda i: (0, 0)),         # W_out (padded)
                pl.BlockSpec((1, out_pad), lambda i: (0, 0)),         # b_out (padded)
            ],
            out_specs=pl.BlockSpec((tb, out_pad), lambda i: (i, 0)),
            scratch_shapes=[pltpu.VMEM((tb, H), jnp.float32)],        # activation
        ),
        compiler_params=pltpu.CompilerParams(
            dimension_semantics=("parallel",)),   # shard batch blocks (megacore)
    )(x_p, fp["w1"], fp["b1"], fp["wh"], fp["bh"], fp["wo"], fp["bo"])

    return out[:B, :out_dim]


# ---------------------------------------------------------------------------
# Parameter construction (mirrors MLP_model.__init__) and host-side folding
# ---------------------------------------------------------------------------

def _xavier_uniform(key, fan_in, fan_out):
    bound = float(jnp.sqrt(6.0 / (fan_in + fan_out)))
    # stored pre-transposed as (in, out) == torch weight (out, in).T
    return jax.random.uniform(key, (fan_in, fan_out), jnp.float32, -bound, bound)


def make_raw_params(key, in_dim, hidden, num_layers, out_dim):
    """linear1..linear{num_layers} (+BatchNorm1d each) and linear_out.

    Biases start at zero (matching the module init); BN gamma=1 / beta=0 with
    non-trivial deterministic running stats so eval-mode folding is exercised.
    """
    assert num_layers >= 2
    layers = []
    dims_in = [in_dim] + [hidden] * (num_layers - 1)
    for i in range(num_layers):
        key, kw, km, kv = jax.random.split(key, 4)
        layers.append(dict(
            w=_xavier_uniform(kw, dims_in[i], hidden),
            b=jnp.zeros((hidden,), jnp.float32),
            gamma=jnp.ones((hidden,), jnp.float32),
            beta=jnp.zeros((hidden,), jnp.float32),
            mean=0.1 * jax.random.normal(km, (hidden,), jnp.float32),
            var=1.0 + 0.05 * jax.random.uniform(kv, (hidden,), jnp.float32),
        ))
    key, kw = jax.random.split(key)
    out = dict(w=_xavier_uniform(kw, hidden, out_dim),
               b=jnp.zeros((out_dim,), jnp.float32))
    return dict(layers=layers, out=out)


def fold_params(raw, compute_dtype=jnp.bfloat16):
    """Fold eval-mode BN + bias into each Linear; stack hidden layers; pad out."""
    ws, bs = [], []
    for lyr in raw["layers"]:
        scale = lyr["gamma"] / jnp.sqrt(lyr["var"] + _BN_EPS)          # (H,)
        shift = lyr["beta"] - lyr["mean"] * scale
        ws.append((lyr["w"] * scale[None, :]).astype(compute_dtype))   # W' = W*scale
        bs.append((lyr["b"] * scale + shift).reshape(1, -1).astype(jnp.float32))

    w_out, b_out = raw["out"]["w"], raw["out"]["b"]
    out_dim = w_out.shape[1]
    out_pad = max(128, _round_up(out_dim, 128))     # lane-dense final store
    wo = jnp.pad(w_out, ((0, 0), (0, out_pad - out_dim))).astype(compute_dtype)
    bo = jnp.pad(b_out, (0, out_pad - out_dim)).reshape(1, out_pad)
    bo = bo.astype(jnp.float32)

    return dict(
        w1=ws[0], b1=bs[0],
        wh=jnp.stack(ws[1:], axis=0),               # (L-1, H, H)
        bh=jnp.stack(bs[1:], axis=0),               # (L-1, 1, H)
        wo=wo, bo=bo,
    )


# ---------------------------------------------------------------------------
# Plain-JAX reference (module's eval semantics)
# ---------------------------------------------------------------------------

def mlp_reference(x, raw):
    # TODO(synk): training-mode Dropout / batch-statistic BatchNorm are not
    # implemented anywhere in this file -- this is eval/inference semantics.
    h = x
    for lyr in raw["layers"]:
        z = h @ lyr["w"] + lyr["b"][None, :]
        z = (z - lyr["mean"][None, :]) / jnp.sqrt(lyr["var"][None, :] + _BN_EPS)
        z = z * lyr["gamma"][None, :] + lyr["beta"][None, :]
        h = jnp.where(z >= 0.0, z, 0.01 * z)
    return h @ raw["out"]["w"] + raw["out"]["b"][None, :]


if __name__ == "__main__":
    # Small, runnable configuration consistent with the module's forward:
    # 784 input features, a stack of hidden layers, 10 outputs. (Module
    # defaults hidden=5500 / num_layers=31 are shrunk for a quick demo; the
    # kernel is size-agnostic as long as hidden is a multiple of 128.)
    BATCH = 100           # deliberately NOT a multiple of the batch tile
    IN_DIM = 784
    HIDDEN = 128
    NUM_LAYERS = 6
    OUT_DIM = 10

    key = jax.random.PRNGKey(0)
    kx, kp = jax.random.split(key)
    x = jax.random.normal(kx, (BATCH, IN_DIM), jnp.float32)
    raw = make_raw_params(kp, IN_DIM, HIDDEN, NUM_LAYERS, OUT_DIM)
    ref = mlp_reference(x, raw)

    # 1) f32 compute path: checks that the fused kernel reproduces the module
    #    semantics (BN folding is mathematically exact in eval mode).
    out_f32 = mlp_forward(x, fold_params(raw, jnp.float32),
                          out_dim=OUT_DIM, tile_b=128)
    out_f32 = jax.block_until_ready(out_f32)
    assert out_f32.shape == (BATCH, OUT_DIM), out_f32.shape
    assert jnp.allclose(out_f32, ref, atol=5e-3, rtol=5e-3), (
        float(jnp.max(jnp.abs(out_f32 - ref))))

    # 2) bf16 compute path (the performance configuration; f32 MXU accumulate).
    #    Small tile here so even the demo batch spans several grid blocks.
    out_bf16 = mlp_forward(x, fold_params(raw, jnp.bfloat16),
                           out_dim=OUT_DIM, tile_b=32)
    out_bf16 = jax.block_until_ready(out_bf16)
    assert out_bf16.shape == (BATCH, OUT_DIM), out_bf16.shape
    err = float(jnp.max(jnp.abs(out_bf16 - ref)))
    assert err <= 0.08 * (float(jnp.max(jnp.abs(ref))) + 1e-6), err

    print("KERNEL_OK")
</pallas_src>

<mosaic_0001>
module attributes {stable_mosaic.version = 11 : i64} {
  func.func @_mlp_fused_kernel(%arg0: i32, %arg1: memref<104x784xf32, #tpu.memory_space<vmem>>, %arg2: memref<784x128xf32, #tpu.memory_space<vmem>>, %arg3: memref<1x128xf32, #tpu.memory_space<vmem>>, %arg4: memref<5x128x128xf32, #tpu.memory_space<vmem>>, %arg5: memref<5x1x128xf32, #tpu.memory_space<vmem>>, %arg6: memref<128x128xf32, #tpu.memory_space<vmem>>, %arg7: memref<1x128xf32, #tpu.memory_space<vmem>>, %arg8: memref<104x128xf32, #tpu.memory_space<vmem>>, %arg9: memref<104x128xf32, #tpu.memory_space<vmem>>) attributes {dimension_semantics = [#tpu.dimension_semantics<parallel>], iteration_bounds = array<i64: 1>, scalar_prefetch = 0 : i64, scratch_operands = 1 : i64, tpu.core_type = #tpu.core_type<tc>, window_params = [{transform_indices = @transform_0, window_bounds = array<i64: 104, 784>}, {pipeline_mode = #tpu.pipeline_mode<synchronous>, transform_indices = @transform_1, window_bounds = array<i64: 784, 128>}, {pipeline_mode = #tpu.pipeline_mode<synchronous>, transform_indices = @transform_2, window_bounds = array<i64: 1, 128>}, {pipeline_mode = #tpu.pipeline_mode<synchronous>, transform_indices = @transform_3, window_bounds = array<i64: 5, 128, 128>}, {pipeline_mode = #tpu.pipeline_mode<synchronous>, transform_indices = @transform_4, window_bounds = array<i64: 5, 1, 128>}, {pipeline_mode = #tpu.pipeline_mode<synchronous>, transform_indices = @transform_5, window_bounds = array<i64: 128, 128>}, {pipeline_mode = #tpu.pipeline_mode<synchronous>, transform_indices = @transform_6, window_bounds = array<i64: 1, 128>}, {transform_indices = @transform_7, window_bounds = array<i64: 104, 128>}]} {
    %c0 = arith.constant 0 : index
    %c0_0 = arith.constant 0 : index
    %0 = vector.load %arg1[%c0, %c0_0] : memref<104x784xf32, #tpu.memory_space<vmem>>, vector<104x784xf32>
    %c0_1 = arith.constant 0 : index
    %c0_2 = arith.constant 0 : index
    %1 = vector.load %arg2[%c0_1, %c0_2] : memref<784x128xf32, #tpu.memory_space<vmem>>, vector<784x128xf32>
    %cst = arith.constant dense<0.000000e+00> : vector<104x128xf32>
    %2 = tpu.matmul %0, %1, %cst {dimension_numbers = #tpu.dot_dimension_numbers<[1], [0], [0], [1], [0, 0, 1, 1], [], []>} : vector<104x784xf32>, vector<784x128xf32>, vector<104x128xf32> -> vector<104x128xf32>
    %c0_3 = arith.constant 0 : index
    %c0_4 = arith.constant 0 : index
    %3 = vector.load %arg3[%c0_3, %c0_4] : memref<1x128xf32, #tpu.memory_space<vmem>>, vector<1x128xf32>
    %4 = vector.broadcast %3 : vector<1x128xf32> to vector<104x128xf32>
    %5 = arith.addf %2, %4 : vector<104x128xf32>
    %cst_5 = arith.constant 0.000000e+00 : f32
    %6 = vector.broadcast %cst_5 : f32 to vector<104x128xf32>
    %7 = arith.cmpf oge, %5, %6 : vector<104x128xf32>
    %cst_6 = arith.constant 0.00999999977 : f32
    %8 = vector.broadcast %cst_6 : f32 to vector<104x128xf32>
    %9 = arith.mulf %8, %5 : vector<104x128xf32>
    %10 = arith.select %7, %5, %9 : vector<104x128xi1>, vector<104x128xf32>
    %c0_7 = arith.constant 0 : index
    %c0_8 = arith.constant 0 : index
    %11 = vector.load %arg9[%c0_7, %c0_8] : memref<104x128xf32, #tpu.memory_space<vmem>>, vector<104x128xf32>
    tpu.vector_store %arg9[%c0_7, %c0_8], %10 {strides = array<i32>} : memref<104x128xf32, #tpu.memory_space<vmem>>, vector<104x128xf32>,
    %c0_i32 = arith.constant 0 : i32
    %c5_i32 = arith.constant 5 : i32
    %12 = arith.addi %c0_i32, %c5_i32 : i32
    %c1_i32 = arith.constant 1 : i32
    scf.for %arg10 = %c0_i32 to %12 step %c1_i32  : i32 {
      %c0_19 = arith.constant 0 : index
      %c0_20 = arith.constant 0 : index
      %20 = vector.load %arg9[%c0_19, %c0_20] : memref<104x128xf32, #tpu.memory_space<vmem>>, vector<104x128xf32>
      %21 = arith.index_cast %arg10 : i32 to index
      %c0_21 = arith.constant 0 : index
      %c0_22 = arith.constant 0 : index
      %22 = vector.load %arg4[%21, %c0_21, %c0_22] : memref<5x128x128xf32, #tpu.memory_space<vmem>>, vector<1x128x128xf32>
      %23 = vector.shape_cast %22 : vector<1x128x128xf32> to vector<128x128xf32>
      %cst_23 = arith.constant dense<0.000000e+00> : vector<104x128xf32>
      %24 = tpu.matmul %20, %23, %cst_23 {dimension_numbers = #tpu.dot_dimension_numbers<[1], [0], [0], [1], [0, 0, 1, 1], [], []>} : vector<104x128xf32>, vector<128x128xf32>, vector<104x128xf32> -> vector<104x128xf32>
      %25 = arith.index_cast %arg10 : i32 to index
      %c0_24 = arith.constant 0 : index
      %c0_25 = arith.constant 0 : index
      %26 = vector.load %arg5[%25, %c0_24, %c0_25] : memref<5x1x128xf32, #tpu.memory_space<vmem>>, vector<1x1x128xf32>
      %27 = vector.shape_cast %26 : vector<1x1x128xf32> to vector<1x128xf32>
      %28 = vector.broadcast %27 : vector<1x128xf32> to vector<104x128xf32>
      %29 = arith.addf %24, %28 : vector<104x128xf32>
      %cst_26 = arith.constant 0.000000e+00 : f32
      %30 = vector.broadcast %cst_26 : f32 to vector<104x128xf32>
      %31 = arith.cmpf oge, %29, %30 : vector<104x128xf32>
      %cst_27 = arith.constant 0.00999999977 : f32
      %32 = vector.broadcast %cst_27 : f32 to vector<104x128xf32>
      %33 = arith.mulf %32, %29 : vector<104x128xf32>
      %34 = arith.select %31, %29, %33 : vector<104x128xi1>, vector<104x128xf32>
      %c0_28 = arith.constant 0 : index
      %c0_29 = arith.constant 0 : index
      %35 = vector.load %arg9[%c0_28, %c0_29] : memref<104x128xf32, #tpu.memory_space<vmem>>, vector<104x128xf32>
      tpu.vector_store %arg9[%c0_28, %c0_29], %34 {strides = array<i32>} : memref<104x128xf32, #tpu.memory_space<vmem>>, vector<104x128xf32>,
    }
    %c5_i32_9 = arith.constant 5 : i32
    %c0_10 = arith.constant 0 : index
    %c0_11 = arith.constant 0 : index
    %13 = vector.load %arg9[%c0_10, %c0_11] : memref<104x128xf32, #tpu.memory_space<vmem>>, vector<104x128xf32>
    %c0_12 = arith.constant 0 : index
    %c0_13 = arith.constant 0 : index
    %14 = vector.load %arg6[%c0_12, %c0_13] : memref<128x128xf32, #tpu.memory_space<vmem>>, vector<128x128xf32>
    %cst_14 = arith.constant dense<0.000000e+00> : vector<104x128xf32>
    %15 = tpu.matmul %13, %14, %cst_14 {dimension_numbers = #tpu.dot_dimension_numbers<[1], [0], [0], [1], [0, 0, 1, 1], [], []>} : vector<104x128xf32>, vector<128x128xf32>, vector<104x128xf32> -> vector<104x128xf32>
    %c0_15 = arith.constant 0 : index
    %c0_16 = arith.constant 0 : index
    %16 = vector.load %arg7[%c0_15, %c0_16] : memref<1x128xf32, #tpu.memory_space<vmem>>, vector<1x128xf32>
    %17 = vector.broadcast %16 : vector<1x128xf32> to vector<104x128xf32>
    %18 = arith.addf %15, %17 : vector<104x128xf32>
    %c0_17 = arith.constant 0 : index
    %c0_18 = arith.constant 0 : index
    %19 = vector.load %arg8[%c0_17, %c0_18] : memref<104x128xf32, #tpu.memory_space<vmem>>, vector<104x128xf32>
    tpu.vector_store %arg8[%c0_17, %c0_18], %18 {strides = array<i32>} : memref<104x128xf32, #tpu.memory_space<vmem>>, vector<104x128xf32>,
    return
  }
  func.func @transform_0(%arg0: i32) -> (i32, i32) {
    %c0_i32 = arith.constant 0 : i32
    %c0_i32_0 = arith.constant 0 : i32
    return %arg0, %c0_i32 : i32, i32
  }
  func.func @transform_1(%arg0: i32) -> (i32, i32) {
    %c0_i32 = arith.constant 0 : i32
    %c0_i32_0 = arith.constant 0 : i32
    %c0_i32_1 = arith.constant 0 : i32
    return %c0_i32, %c0_i32_0 : i32, i32
  }
  func.func @transform_2(%arg0: i32) -> (i32, i32) {
    %c0_i32 = arith.constant 0 : i32
    %c0_i32_0 = arith.constant 0 : i32
    %c0_i32_1 = arith.constant 0 : i32
    return %c0_i32, %c0_i32_0 : i32, i32
  }
  func.func @transform_3(%arg0: i32) -> (i32, i32, i32) {
    %c0_i32 = arith.constant 0 : i32
    %c0_i32_0 = arith.constant 0 : i32
    %c0_i32_1 = arith.constant 0 : i32
    %c0_i32_2 = arith.constant 0 : i32
    return %c0_i32, %c0_i32_0, %c0_i32_1 : i32, i32, i32
  }
  func.func @transform_4(%arg0: i32) -> (i32, i32, i32) {
    %c0_i32 = arith.constant 0 : i32
    %c0_i32_0 = arith.constant 0 : i32
    %c0_i32_1 = arith.constant 0 : i32
    %c0_i32_2 = arith.constant 0 : i32
    return %c0_i32, %c0_i32_0, %c0_i32_1 : i32, i32, i32
  }
  func.func @transform_5(%arg0: i32) -> (i32, i32) {
    %c0_i32 = arith.constant 0 : i32
    %c0_i32_0 = arith.constant 0 : i32
    %c0_i32_1 = arith.constant 0 : i32
    return %c0_i32, %c0_i32_0 : i32, i32
  }
  func.func @transform_6(%arg0: i32) -> (i32, i32) {
    %c0_i32 = arith.constant 0 : i32
    %c0_i32_0 = arith.constant 0 : i32
    %c0_i32_1 = arith.constant 0 : i32
    return %c0_i32, %c0_i32_0 : i32, i32
  }
  func.func @transform_7(%arg0: i32) -> (i32, i32) {
    %c0_i32 = arith.constant 0 : i32
    %c0_i32_0 = arith.constant 0 : i32
    return %arg0, %c0_i32 : i32, i32
  }
}

</mosaic_0001>

<bundles_post_ra>
// kernel: mlp_forward.1
= control target key start
LH: loop header
LB: loop body
LE: loop exit
PB: predicated region body
PF: predicated region fallthrough
CT: control target
= control target key end

     0   :  { %12 = vsyncpa [#allocation4], 0  ;;  %s1864_s24 = smov [#allocation3]   ;;  %s2861_s0 = inlined_call_operand.vmem [shape: f32[104,784], index: 0, kind: input, shape index: {}]   ;;  %s2862_s1 = inlined_call_operand.vmem [shape: f32[784,128], index: 1, kind: input, shape index: {}]   ;;  %s2863_s2 = inlined_call_operand.vmem [shape: f32[1,128], index: 2, kind: input, shape index: {}]   ;;  %s2864_s3 = inlined_call_operand.vmem [shape: f32[5,128,128], index: 3, kind: input, shape index: {}]   ;;  %s2865_s4 = inlined_call_operand.vmem [shape: f32[5,1,128], index: 4, kind: input, shape index: {}]   ;;  %s2866_s5 = inlined_call_operand.hbm [shape: f32[128,128], index: 5, kind: input, shape index: {}]   ;;  %s2867_s6 = inlined_call_operand.vmem [shape: f32[1,128], index: 6, kind: input, shape index: {}]   ;;  %s2868_s7 = inlined_call_operand.vmem [shape: f32[104,128], index: 7, kind: output, shape index: {}]  }
   0x1   :  { %s28_s25 = sshll.u32 %s1864_s24, 4  ;;  %s29_s25 = int_to_ptr.vmem [resolvable:$true] %s28_s25 }
   0x2   :  { %s1842_s26 = scalar_lea.vmem %s29_s25, 2048  ;;  %p1847_p1 = scmp.lt.s32.totalorder %s29_s25, %s29_s25 }
   0x3   :  { %p1843_p0 = scmp.ne.s32.totalorder %s29_s25, %s1842_s26  ;;  %p1848_p2 = scmp.lt.s32.totalorder %s1842_s26, %s1842_s26 }
   0x5   :  { %p1849_p3 = por %p1848_p2, %p1847_p1 }
   0x7   :  { %p1850_p4 = pnand %p1849_p3, %p1843_p0 }
   0x9   :  { %1853 = shalt.err (!%p1850_p4)
}
   0xa   :  { %s1865_s27 = smov 128   ;;  %s1866_s28 = smov 8  }
   0xb   :  { %34 = dma.hbm_to_vmem [thread:$0]  %s2866_s5, 2048, %s29_s25, [#allocation4], %s1865_s27, %s1865_s27, %s1866_s28  }
   0xc   :  { %1858 = dma.done.wait [#allocation4], 2048  }
   0xd   :  { %1859 = vsyncadd [#allocation4], 4294965248  ;;  %v162_v0 = vld [vmem:[%s2862_s1 + $0xf8] sm:$0xff]  ;;  %v161_v2 = vld [vmem:[%s2862_s1 + $0xf0] sm:$0xff]  ;;  %vm1868_vm0 = vmmov 0   ;;  %vm236_vm1 = vcmask 130048  }
   0xe   :  { %v146_v1 = vld [vmem:[%s2862_s1 + $0x78] sm:$0xff]  ;;  %1284 = vmatprep.subr.mxu0 %v162_v0  ;;  %v145_v4 = vld [vmem:[%s2862_s1 + $0x70] sm:$0xff]  ;;  %v160_v6 = vld [vmem:[%s2862_s1 + $0xe8] sm:$0xff] }
   0xf   :  { %v194_v3 = vld [vmem:[%s2862_s1 + $0x1f8] sm:$0xff]  ;;  %1285 = vmatpush3.msra.mxu0 %v146_v1  ;;  %v193_v7 = vld [vmem:[%s2862_s1 + $0x1f0] sm:$0xff]  ;;  %v144_v8 = vld [vmem:[%s2862_s1 + $0x68] sm:$0xff] }
  0x10   :  { %v178_v5 = vld [vmem:[%s2862_s1 + $0x178] sm:$0xff]  ;;  %1355 = vmatprep.subr.mxu1 %v194_v3  ;;  %1286 = vmatprep.subr.mxu0 %v161_v2  ;;  %v177_v9 = vld [vmem:[%s2862_s1 + $0x170] sm:$0xff]  ;;  %v192_v10 = vld [vmem:[%s2862_s1 + $0x1e8] sm:$0xff] }
  0x11   :  { %1356 = vmatpush3.msra.mxu1 %v178_v5  ;;  %1287 = vmatpush3.msra.mxu0 %v145_v4  ;;  %v159_v11 = vld [vmem:[%s2862_s1 + $0xe0] sm:$0xff]  ;;  %v176_v12 = vld [vmem:[%s2862_s1 + $0x168] sm:$0xff]  ;;  %v158_v15 = vld [vmem:[%s2862_s1 + $0xd8] sm:$0xff] }
  0x12   :  { %1357 = vmatprep.subr.mxu1 %v193_v7  ;;  %1288 = vmatprep.subr.mxu0 %v160_v6  ;;  %v143_v13 = vld [vmem:[%s2862_s1 + $0x60] sm:$0xff]  ;;  %v142_v17 = vld [vmem:[%s2862_s1 + $0x58] sm:$0xff]  ;;  %v157_v19 = vld [vmem:[%s2862_s1 + $0xd0] sm:$0xff] }
  0x13   :  { %1358 = vmatpush3.msra.mxu1 %v177_v9  ;;  %v191_v14 = vld [vmem:[%s2862_s1 + $0x1e0] sm:$0xff]  ;;  %1289 = vmatpush3.msra.mxu0 %v144_v8  ;;  %v190_v18 = vld [vmem:[%s2862_s1 + $0x1d8] sm:$0xff]  ;;  %v141_v21 = vld [vmem:[%s2862_s1 + $0x50] sm:$0xff] }
  0x14   :  { %1359 = vmatprep.subr.mxu1 %v192_v10  ;;  %v175_v16 = vld [vmem:[%s2862_s1 + $0x160] sm:$0xff]  ;;  %1290 = vmatprep.subr.mxu0 %v159_v11  ;;  %v174_v20 = vld [vmem:[%s2862_s1 + $0x158] sm:$0xff]  ;;  %v189_v22 = vld [vmem:[%s2862_s1 + $0x1d0] sm:$0xff] }
  0x15   :  { %1360 = vmatpush3.msra.mxu1 %v176_v12  ;;  %1291 = vmatpush3.msra.mxu0 %v143_v13  ;;  %v156_v23 = vld [vmem:[%s2862_s1 + $0xc8] sm:$0xff]  ;;  %v173_v24 = vld [vmem:[%s2862_s1 + $0x150] sm:$0xff]  ;;  %v155_v27 = vld [vmem:[%s2862_s1 + $0xc0] sm:$0xff] }
  0x16   :  { %1361 = vmatprep.subr.mxu1 %v191_v14  ;;  %1292 = vmatprep.subr.mxu0 %v158_v15  ;;  %v140_v25 = vld [vmem:[%s2862_s1 + $0x48] sm:$0xff]  ;;  %v139_v29 = vld [vmem:[%s2862_s1 + $0x40] sm:$0xff]  ;;  %v154_v31 = vld [vmem:[%s2862_s1 + $0xb8] sm:$0xff] }
  0x17   :  { %1362 = vmatpush3.msra.mxu1 %v175_v16  ;;  %1293 = vmatpush3.msra.mxu0 %v142_v17  ;;  %v188_v26 = vld [vmem:[%s2862_s1 + $0x1c8] sm:$0xff]  ;;  %v187_v30 = vld [vmem:[%s2862_s1 + $0x1c0] sm:$0xff]  ;;  %v138_v33 = vld [vmem:[%s2862_s1 + $0x38] sm:$0xff]  ;;  %v2869_v16 = vmov 0.0  }
  0x18   :  { %1363 = vmatprep.subr.mxu1 %v190_v18  ;;  %1294 = vmatprep.subr.mxu0 %v157_v19  ;;  %v172_v28 = vld [vmem:[%s2862_s1 + $0x148] sm:$0xff]  ;;  %v171_v32 = vld [vmem:[%s2862_s1 + $0x140] sm:$0xff]  ;;  %v186_v34 = vld [vmem:[%s2862_s1 + $0x1b8] sm:$0xff] }
  0x19   :  { %1364 = vmatpush3.msra.mxu1 %v174_v20  ;;  %1295 = vmatpush3.msra.mxu0 %v141_v21  ;;  %v153_v35 = vld [vmem:[%s2862_s1 + $0xb0] sm:$0xff]  ;;  %v170_v36 = vld [vmem:[%s2862_s1 + $0x138] sm:$0xff]  ;;  %v152_v39 = vld [vmem:[%s2862_s1 + $0xa8] sm:$0xff] }
  0x1a   :  { %1365 = vmatprep.subr.mxu1 %v189_v22  ;;  %1296 = vmatprep.subr.mxu0 %v156_v23  ;;  %v137_v37 = vld [vmem:[%s2862_s1 + $0x30] sm:$0xff]  ;;  %v136_v41 = vld [vmem:[%s2862_s1 + $0x28] sm:$0xff]  ;;  %v151_v43 = vld [vmem:[%s2862_s1 + $0xa0] sm:$0xff] }
  0x1b   :  { %1366 = vmatpush3.msra.mxu1 %v173_v24  ;;  %1297 = vmatpush3.msra.mxu0 %v140_v25  ;;  %v185_v38 = vld [vmem:[%s2862_s1 + $0x1b0] sm:$0xff]  ;;  %v184_v42 = vld [vmem:[%s2862_s1 + $0x1a8] sm:$0xff]  ;;  %v135_v45 = vld [vmem:[%s2862_s1 + $0x20] sm:$0xff] }
  0x1c   :  { %1367 = vmatprep.subr.mxu1 %v188_v26  ;;  %1298 = vmatprep.subr.mxu0 %v155_v27  ;;  %v169_v40 = vld [vmem:[%s2862_s1 + $0x130] sm:$0xff]  ;;  %v168_v44 = vld [vmem:[%s2862_s1 + $0x128] sm:$0xff]  ;;  %v183_v46 = vld [vmem:[%s2862_s1 + $0x1a0] sm:$0xff] }
  0x1d   :  { %1368 = vmatpush3.msra.mxu1 %v172_v28  ;;  %1299 = vmatpush3.msra.mxu0 %v139_v29  ;;  %v150_v47 = vld [vmem:[%s2862_s1 + $0x98] sm:$0xff]  ;;  %v167_v48 = vld [vmem:[%s2862_s1 + $0x120] sm:$0xff]  ;;  %v149_v51 = vld [vmem:[%s2862_s1 + $0x90] sm:$0xff] }
  0x1e   :  { %1369 = vmatprep.subr.mxu1 %v187_v30  ;;  %1300 = vmatprep.subr.mxu0 %v154_v31  ;;  %v134_v49 = vld [vmem:[%s2862_s1 + $0x18] sm:$0xff]  ;;  %v133_v53 = vld [vmem:[%s2862_s1 + $0x10] sm:$0xff]  ;;  %v148_v55 = vld [vmem:[%s2862_s1 + $0x88] sm:$0xff] }
  0x1f   :  { %1370 = vmatpush3.msra.mxu1 %v171_v32  ;;  %1301 = vmatpush3.msra.mxu0 %v138_v33  ;;  %v182_v50 = vld [vmem:[%s2862_s1 + $0x198] sm:$0xff]  ;;  %v181_v54 = vld [vmem:[%s2862_s1 + $0x190] sm:$0xff]  ;;  %v132_v57 = vld [vmem:[%s2862_s1 + $0x8] sm:$0xff] }
  0x20   :  { %1371 = vmatprep.subr.mxu1 %v186_v34  ;;  %1302 = vmatprep.subr.mxu0 %v153_v35  ;;  %v166_v52 = vld [vmem:[%s2862_s1 + $0x118] sm:$0xff]  ;;  %v165_v56 = vld [vmem:[%s2862_s1 + $0x110] sm:$0xff]  ;;  %v180_v58 = vld [vmem:[%s2862_s1 + $0x188] sm:$0xff] }
  0x21   :  { %1372 = vmatpush3.msra.mxu1 %v170_v36  ;;  %1303 = vmatpush3.msra.mxu0 %v137_v37  ;;  %v147_v59 = vld [vmem:[%s2862_s1 + $0x80] sm:$0xff]  ;;  %v41_v60 = vld [vmem:[%s2861_s0 + $0x8] sm:$0xff]  ;;  %v226_v1 = vld [vmem:[%s2862_s1 + $0x2f8] sm:$0xff] }
  0x22   :  { %1373 = vmatprep.subr.mxu1 %v185_v38  ;;  %1304 = vmatprep.subr.mxu0 %v152_v39  ;;  %v131_v61 = vld [vmem:[%s2862_s1] sm:$0xff]  ;;  %v164_v62 = vld [vmem:[%s2862_s1 + $0x108] sm:$0xff]  ;;  %v43_v3 = vld [vmem:[%s2861_s0 + $0x18] sm:$0xff] }
  0x23   :  { %1374 = vmatpush3.msra.mxu1 %v169_v40  ;;  %1305 = vmatpush3.msra.mxu0 %v136_v41  ;;  %v40_v63 = vld [vmem:[%s2861_s0] sm:$0xff]  ;;  %v210_v4 = vld [vmem:[%s2862_s1 + $0x278] sm:$0xff]  ;;  %v42_v5 = vld [vmem:[%s2861_s0 + $0x10] sm:$0xff] }
  0x24   :  { %1375 = vmatprep.subr.mxu1 %v184_v42  ;;  %1306 = vmatprep.subr.mxu0 %v151_v43  ;;  %v179_v0 = vld [vmem:[%s2862_s1 + $0x180] sm:$0xff]  ;;  %v47_v7 = vld [vmem:[%s2861_s0 + $0x38] sm:$0xff]  ;;  %v225_v8 = vld [vmem:[%s2862_s1 + $0x2f0] sm:$0xff] }
  0x25   :  { %1376 = vmatpush3.msra.mxu1 %v168_v44  ;;  %1307 = vmatpush3.msra.mxu0 %v135_v45  ;;  %v163_v2 = vld [vmem:[%s2862_s1 + $0x100] sm:$0xff]  ;;  %v50_v9 = vld [vmem:[%s2861_s0 + $0x50] sm:$0xff]  ;;  %v55_v11 = vld [vmem:[%s2861_s0 + $0x78] sm:$0xff] }
  0x26   :  { %1377 = vmatprep.subr.mxu1 %v183_v46  ;;  %1308 = vmatprep.subr.mxu0 %v150_v47  ;;  %v48_v6 = vld [vmem:[%s2861_s0 + $0x40] sm:$0xff]  ;;  %v209_v10 = vld [vmem:[%s2862_s1 + $0x270] sm:$0xff]  ;;  %v49_v12 = vld [vmem:[%s2861_s0 + $0x48] sm:$0xff] }
  0x27   :  { %1378 = vmatpush3.msra.mxu1 %v167_v48  ;;  %1309 = vmatpush3.msra.mxu0 %v134_v49  ;;  %v224_v13 = vld [vmem:[%s2862_s1 + $0x2e8] sm:$0xff]  ;;  %v54_v15 = vld [vmem:[%s2861_s0 + $0x70] sm:$0xff]  ;;  %v223_v19 = vld [vmem:[%s2862_s1 + $0x2e0] sm:$0xff] }
  0x28   :  { %1379 = vmatprep.subr.mxu1 %v182_v50  ;;  %1310 = vmatprep.subr.mxu0 %v149_v51  ;;  %v228_v14 = vld [vmem:[%s2862_s1 + $0x308] sm:$0xff]  ;;  %v62_v20 = vld [vmem:[%s2861_s0 + $0xb0] sm:$0xff]  ;;  %v56_v21 = vld [vmem:[%s2861_s0 + $0x80] sm:$0xff] }
  0x29   :  { %1380 = vmatpush3.msra.mxu1 %v166_v52  ;;  %1311 = vmatpush3.msra.mxu0 %v133_v53  ;;  %v208_v17 = vld [vmem:[%s2862_s1 + $0x268] sm:$0xff]  ;;  %v207_v22 = vld [vmem:[%s2862_s1 + $0x260] sm:$0xff]  ;;  %v222_v25 = vld [vmem:[%s2862_s1 + $0x2d8] sm:$0xff] }
  0x2a   :  { %1381 = vmatprep.subr.mxu1 %v181_v54  ;;  %1312 = vmatprep.subr.mxu0 %v148_v55  ;;  %v57_v18 = vld [vmem:[%s2861_s0 + $0x88] sm:$0xff]  ;;  %v64_v24 = vld [vmem:[%s2861_s0 + $0xc0] sm:$0xff]  ;;  %v206_v27 = vld [vmem:[%s2862_s1 + $0x258] sm:$0xff] }
  0x2b   :  { %1382 = vmatpush3.msra.mxu1 %v165_v56  ;;  %1313 = vmatpush3.msra.mxu0 %v132_v57  ;;  %v61_v23 = vld [vmem:[%s2861_s0 + $0xa8] sm:$0xff]  ;;  %v63_v28 = vld [vmem:[%s2861_s0 + $0xb8] sm:$0xff]  ;;  %v221_v29 = vld [vmem:[%s2862_s1 + $0x2d0] sm:$0xff] }
  0x2c   :  { %1383 = vmatprep.subr.mxu1 %v180_v58  ;;  %1314 = vmatprep.subr.mxu0 %v147_v59  ;;  %v69_v26 = vld [vmem:[%s2861_s0 + $0xe8] sm:$0xff]  ;;  %v68_v30 = vld [vmem:[%s2861_s0 + $0xe0] sm:$0xff]  ;;  %v71_v31 = vld [vmem:[%s2861_s0 + $0xf8] sm:$0xff] }
  0x2d   :  { %340 = vmatprep.mubr.f32.mxu0 %v41_v60  ;;  %1315 = vmatpush3.msra.mxu0 %v131_v61  ;;  %v205_v32 = vld [vmem:[%s2862_s1 + $0x250] sm:$0xff]  ;;  %v76_v33 = vld [vmem:[%s2861_s0 + $0x120] sm:$0xff]  ;;  %v220_v34 = vld [vmem:[%s2862_s1 + $0x2c8] sm:$0xff] }
  0x2e   :  { %1384 = vmatpush3.msra.mxu1 %v164_v62  ;;  %341 = vmatmul.mubr.f32.vlgmr.msra.gmra.mxu0 %v40_v63  ;;  %v227_v35 = vld [vmem:[%s2862_s1 + $0x300] sm:$0xff]  ;;  %v70_v36 = vld [vmem:[%s2861_s0 + $0xf0] sm:$0xff]  ;;  %v204_v37 = vld [vmem:[%s2862_s1 + $0x248] sm:$0xff] }
  0x2f   :  { %1385 = vmatprep.subr.mxu1 %v179_v0  ;;  %1426 = vmatprep.subr.mxu0 %v226_v1  ;;  %v75_v38 = vld [vmem:[%s2861_s0 + $0x118] sm:$0xff]  ;;  %v78_v39 = vld [vmem:[%s2861_s0 + $0x130] sm:$0xff]  ;;  %v219_v41 = vld [vmem:[%s2862_s1 + $0x2c0] sm:$0xff] }
  0x30   :  { %1386 = vmatpush3.msra.mxu1 %v163_v2  ;;  %470 = vmatprep.mubr.f32.mxu1 %v43_v3  ;;  %v83_v40 = vld [vmem:[%s2861_s0 + $0x158] sm:$0xff]  ;;  %v203_v42 = vld [vmem:[%s2862_s1 + $0x240] sm:$0xff]  ;;  %v77_v43 = vld [vmem:[%s2861_s0 + $0x128] sm:$0xff] }
  0x31   :  { %1427 = vmatpush3.msra.mxu0 %v210_v4  ;;  %471 = vmatmul.mubr.f32.vlgmr.msra.gmra.mxu1 %v42_v5  ;;  %v218_v44 = vld [vmem:[%s2862_s1 + $0x2b8] sm:$0xff]  ;;  %v82_v45 = vld [vmem:[%s2861_s0 + $0x150] sm:$0xff]  ;;  %v85_v46 = vld [vmem:[%s2861_s0 + $0x168] sm:$0xff] }
  0x32   :  { %345 = vmatprep.mubr.f32.mxu0 %v48_v6  ;;  %1428 = vmatprep.subr.mxu0 %v225_v8  ;;  %v90_v47 = vld [vmem:[%s2861_s0 + $0x190] sm:$0xff]  ;;  %v202_v48 = vld [vmem:[%s2862_s1 + $0x238] sm:$0xff]  ;;  %v84_v50 = vld [vmem:[%s2861_s0 + $0x160] sm:$0xff] }
  0x33   :  { %346 = vmatmul.mubr.f32.gmra.mxu0 %v47_v7  ;;  %475 = vmatprep.mubr.f32.mxu1 %v50_v9  ;;  %v217_v49 = vld [vmem:[%s2862_s1 + $0x2b0] sm:$0xff]  ;;  %v89_v52 = vld [vmem:[%s2861_s0 + $0x188] sm:$0xff]  ;;  %v92_v53 = vld [vmem:[%s2861_s0 + $0x1a0] sm:$0xff] }
  0x34   :  { %1429 = vmatpush3.msra.mxu0 %v209_v10  ;;  %1570 = vmatprep.subr.mxu1 %v2869_v16  ;;  %v201_v51 = vld [vmem:[%s2862_s1 + $0x230] sm:$0xff]  ;;  %v97_v54 = vld [vmem:[%s2861_s0 + $0x1c8] sm:$0xff]  ;;  %v91_v57 = vld [vmem:[%s2861_s0 + $0x198] sm:$0xff] }
  0x35   :  { %350 = vmatprep.mubr.f32.mxu0 %v55_v11  ;;  %476 = vmatmul.mubr.f32.gmra.mxu1 %v49_v12  ;;  %v216_v55 = vld [vmem:[%s2862_s1 + $0x2a8] sm:$0xff]  ;;  %v215_v58 = vld [vmem:[%s2862_s1 + $0x2a0] sm:$0xff]  ;;  %v99_v60 = vld [vmem:[%s2861_s0 + $0x1d8] sm:$0xff] }
  0x36   :  { %1430 = vmatprep.subr.mxu0 %v224_v13  ;;  %1571 = vmatpush3.msra.mxu1 %v228_v14  ;;  %v200_v56 = vld [vmem:[%s2862_s1 + $0x228] sm:$0xff]  ;;  %v96_v59 = vld [vmem:[%s2861_s0 + $0x1c0] sm:$0xff]  ;;  %v214_v63 = vld [vmem:[%s2862_s1 + $0x298] sm:$0xff] }
  0x37   :  { %351 = vmatmul.mubr.f32.gmra.mxu0 %v54_v15  ;;  %480 = vmatprep.mubr.f32.mxu1 %v57_v18  ;;  %v104_v61 = vld [vmem:[%s2861_s0 + $0x200] sm:$0xff]  ;;  %v98_v0 = vld [vmem:[%s2861_s0 + $0x1d0] sm:$0xff]  ;;  %v198_v1 = vld [vmem:[%s2862_s1 + $0x218] sm:$0xff] }
  0x38   :  { %1431 = vmatpush3.msra.mxu0 %v208_v17  ;;  %355 = vmatprep.mubr.f32.mxu0 %v62_v20  ;;  %v199_v62 = vld [vmem:[%s2862_s1 + $0x220] sm:$0xff]  ;;  %v103_v2 = vld [vmem:[%s2861_s0 + $0x1f8] sm:$0xff]  ;;  %v106_v3 = vld [vmem:[%s2861_s0 + $0x210] sm:$0xff] }
  0x39   :  { %1432 = vmatprep.subr.mxu0 %v223_v19  ;;  %481 = vmatmul.mubr.f32.gmra.mxu1 %v56_v21  ;;  %v111_v4 = vld [vmem:[%s2861_s0 + $0x238] sm:$0xff]  ;;  %v213_v5 = vld [vmem:[%s2862_s1 + $0x290] sm:$0xff]  ;;  %v105_v7 = vld [vmem:[%s2861_s0 + $0x208] sm:$0xff] }
  0x3a   :  { %1433 = vmatpush3.msra.mxu0 %v207_v22  ;;  %485 = vmatprep.mubr.f32.mxu1 %v64_v24  ;;  %v197_v6 = vld [vmem:[%s2862_s1 + $0x210] sm:$0xff]  ;;  %v212_v8 = vld [vmem:[%s2862_s1 + $0x288] sm:$0xff]  ;;  %v211_v13 = vld [vmem:[%s2862_s1 + $0x280] sm:$0xff] }
  0x3b   :  { %356 = vmatmul.mubr.f32.gmra.mxu0 %v61_v23  ;;  %1434 = vmatprep.subr.mxu0 %v222_v25  ;;  %v110_v9 = vld [vmem:[%s2861_s0 + $0x230] sm:$0xff]  ;;  %v113_v10 = vld [vmem:[%s2861_s0 + $0x248] sm:$0xff]  ;;  %v112_v14 = vld [vmem:[%s2861_s0 + $0x240] sm:$0xff] }
  0x3c   :  { %360 = vmatprep.mubr.f32.mxu0 %v69_v26  ;;  %1435 = vmatpush3.msra.mxu0 %v206_v27  ;;  %v118_v11 = vld [vmem:[%s2861_s0 + $0x270] sm:$0xff]  ;;  %v196_v12 = vld [vmem:[%s2862_s1 + $0x208] sm:$0xff]  ;;  %v195_v15 = vld [vmem:[%s2862_s1 + $0x200] sm:$0xff] }
  0x3d   :  { %1572 = vmatprep.subr.mxu1 %v2869_v16  ;;  %486 = vmatmul.mubr.f32.gmra.mxu1 %v63_v28  ;;  %v117_v17 = vld [vmem:[%s2861_s0 + $0x268] sm:$0xff]  ;;  %v120_v18 = vld [vmem:[%s2861_s0 + $0x280] sm:$0xff]  ;;  %v119_v20 = vld [vmem:[%s2861_s0 + $0x278] sm:$0xff] }
  0x3e   :  { %1436 = vmatprep.subr.mxu0 %v221_v29  ;;  %490 = vmatprep.mubr.f32.mxu1 %v71_v31  ;;  %v125_v19 = vld [vmem:[%s2861_s0 + $0x2a8] sm:$0xff]  ;;  %v124_v21 = vld [vmem:[%s2861_s0 + $0x2a0] sm:$0xff]  ;;  %v127_v22 = vld [vmem:[%s2861_s0 + $0x2b8] sm:$0xff] }
  0x3f   :  { %361 = vmatmul.mubr.f32.gmra.mxu0 %v68_v30  ;;  %1573 = vmatpush3.msra.mxu1 %v227_v35  ;;  %v45_v23 = vld [vmem:[%s2861_s0 + $0x28] sm:$0xff]  ;;  %v126_v24 = vld [vmem:[%s2861_s0 + $0x2b0] sm:$0xff]  ;;  %v44_v25 = vld [vmem:[%s2861_s0 + $0x20] sm:$0xff] }
  0x40   :  { %1437 = vmatpush3.msra.mxu0 %v205_v32  ;;  %365 = vmatprep.mubr.f32.mxu0 %v76_v33  ;;  %v52_v26 = vld [vmem:[%s2861_s0 + $0x60] sm:$0xff]  ;;  %v46_v27 = vld [vmem:[%s2861_s0 + $0x30] sm:$0xff]  ;;  %v51_v28 = vld [vmem:[%s2861_s0 + $0x58] sm:$0xff] }
  0x41   :  { %1438 = vmatprep.subr.mxu0 %v220_v34  ;;  %491 = vmatmul.mubr.f32.gmra.mxu1 %v70_v36  ;;  %v59_v29 = vld [vmem:[%s2861_s0 + $0x98] sm:$0xff]  ;;  %v53_v30 = vld [vmem:[%s2861_s0 + $0x68] sm:$0xff]  ;;  %v58_v31 = vld [vmem:[%s2861_s0 + $0x90] sm:$0xff] }
  0x42   :  { %1439 = vmatpush3.msra.mxu0 %v204_v37  ;;  %495 = vmatprep.mubr.f32.mxu1 %v78_v39  ;;  %v66_v32 = vld [vmem:[%s2861_s0 + $0xd0] sm:$0xff]  ;;  %v60_v33 = vld [vmem:[%s2861_s0 + $0xa0] sm:$0xff]  ;;  %v65_v34 = vld [vmem:[%s2861_s0 + $0xc8] sm:$0xff] }
  0x43   :  { %366 = vmatmul.mubr.f32.gmra.mxu0 %v75_v38  ;;  %1440 = vmatprep.subr.mxu0 %v219_v41  ;;  %v73_v35 = vld [vmem:[%s2861_s0 + $0x108] sm:$0xff]  ;;  %v67_v36 = vld [vmem:[%s2861_s0 + $0xd8] sm:$0xff]  ;;  %v72_v37 = vld [vmem:[%s2861_s0 + $0x100] sm:$0xff] }
  0x44   :  { %370 = vmatprep.mubr.f32.mxu0 %v83_v40  ;;  %1441 = vmatpush3.msra.mxu0 %v203_v42  ;;  %v80_v38 = vld [vmem:[%s2861_s0 + $0x140] sm:$0xff]  ;;  %v74_v39 = vld [vmem:[%s2861_s0 + $0x110] sm:$0xff]  ;;  %v79_v40 = vld [vmem:[%s2861_s0 + $0x138] sm:$0xff] }
  0x45   :  { %496 = vmatmul.mubr.f32.gmra.mxu1 %v77_v43  ;;  %1442 = vmatprep.subr.mxu0 %v218_v44  ;;  %v87_v41 = vld [vmem:[%s2861_s0 + $0x178] sm:$0xff]  ;;  %v81_v42 = vld [vmem:[%s2861_s0 + $0x148] sm:$0xff]  ;;  %v86_v43 = vld [vmem:[%s2861_s0 + $0x170] sm:$0xff] }
  0x46   :  { %500 = vmatprep.mubr.f32.mxu1 %v85_v46  ;;  %1443 = vmatpush3.msra.mxu0 %v202_v48  ;;  %v94_v44 = vld [vmem:[%s2861_s0 + $0x1b0] sm:$0xff]  ;;  %v93_v46 = vld [vmem:[%s2861_s0 + $0x1a8] sm:$0xff]  ;;  %v95_v48 = vld [vmem:[%s2861_s0 + $0x1b8] sm:$0xff] }
  0x47   :  { %371 = vmatmul.mubr.f32.gmra.mxu0 %v82_v45  ;;  %1444 = vmatprep.subr.mxu0 %v217_v49  ;;  %v88_v45 = vld [vmem:[%s2861_s0 + $0x180] sm:$0xff] }
  0x48   :  { %375 = vmatprep.mubr.f32.mxu0 %v90_v47  ;;  %1445 = vmatpush3.msra.mxu0 %v201_v51  ;;  %v101_v47 = vld [vmem:[%s2861_s0 + $0x1e8] sm:$0xff]  ;;  %v100_v49 = vld [vmem:[%s2861_s0 + $0x1e0] sm:$0xff]  ;;  %v102_v51 = vld [vmem:[%s2861_s0 + $0x1f0] sm:$0xff] }
  0x49   :  { %501 = vmatmul.mubr.f32.gmra.mxu1 %v84_v50  ;;  %1446 = vmatprep.subr.mxu0 %v216_v55  ;;  %v108_v50 = vld [vmem:[%s2861_s0 + $0x220] sm:$0xff]  ;;  %v114_v55 = vld [vmem:[%s2861_s0 + $0x250] sm:$0xff] }
  0x4a   :  { %505 = vmatprep.mubr.f32.mxu1 %v92_v53  ;;  %1447 = vmatpush3.msra.mxu0 %v200_v56  ;;  %v115_v53 = vld [vmem:[%s2861_s0 + $0x258] sm:$0xff]  ;;  %v122_v56 = vld [vmem:[%s2861_s0 + $0x290] sm:$0xff] }
  0x4b   :  { %376 = vmatmul.mubr.f32.gmra.mxu0 %v89_v52  ;;  %1448 = vmatprep.subr.mxu0 %v215_v58  ;;  %v107_v52 = vld [vmem:[%s2861_s0 + $0x218] sm:$0xff]  ;;  %v121_v58 = vld [vmem:[%s2861_s0 + $0x288] sm:$0xff] }
  0x4c   :  { %380 = vmatprep.mubr.f32.mxu0 %v97_v54  ;;  %1449 = vmatpush3.msra.mxu0 %v199_v62  ;;  %v109_v54 = vld [vmem:[%s2861_s0 + $0x228] sm:$0xff]  ;;  %v130_v62 = vld [vmem:[%s2861_s0 + $0x2d0] sm:$0xff] }
  0x4d   :  { %506 = vmatmul.mubr.f32.gmra.mxu1 %v91_v57  ;;  %1450 = vmatprep.subr.mxu0 %v214_v63  ;;  %v116_v57 = vld [vmem:[%s2861_s0 + $0x260] sm:$0xff] }
  0x4e   :  { %510 = vmatprep.mubr.f32.mxu1 %v99_v60  ;;  %1451 = vmatpush3.msra.mxu0 %v198_v1  ;;  %v123_v60 = vld [vmem:[%s2861_s0 + $0x298] sm:$0xff] }
  0x4f   :  { %381 = vmatmul.mubr.f32.gmra.mxu0 %v96_v59  ;;  %1452 = vmatprep.subr.mxu0 %v213_v5  ;;  %v129_v59 = vld [vmem:[%s2861_s0 + $0x2c8] sm:$0xff] }
  0x50   :  { %385 = vmatprep.mubr.f32.mxu0 %v104_v61  ;;  %1453 = vmatpush3.msra.mxu0 %v197_v6  ;;  %v128_v61 = vld [vmem:[%s2861_s0 + $0x2c0] sm:$0xff] }
  0x51   :  { %511 = vmatmul.mubr.f32.gmra.mxu1 %v98_v0  ;;  %1454 = vmatprep.subr.mxu0 %v212_v8 }
  0x52   :  { %515 = vmatprep.mubr.f32.mxu1 %v106_v3  ;;  %1455 = vmatpush3.msra.mxu0 %v196_v12 }
  0x53   :  { %386 = vmatmul.mubr.f32.gmra.mxu0 %v103_v2  ;;  %1456 = vmatprep.subr.mxu0 %v211_v13 }
  0x54   :  { %390 = vmatprep.mubr.f32.mxu0 %v111_v4  ;;  %1457 = vmatpush3.msra.mxu0 %v195_v15 }
  0x55   :  { %516 = vmatmul.mubr.f32.gmra.mxu1 %v105_v7 }
  0x56   :  { %520 = vmatprep.mubr.f32.mxu1 %v113_v10 }
  0x57   :  { %391 = vmatmul.mubr.f32.gmra.mxu0 %v110_v9 }
  0x58   :  { %395 = vmatprep.mubr.f32.mxu0 %v118_v11 }
  0x59   :  { %521 = vmatmul.mubr.f32.gmra.mxu1 %v112_v14 }
  0x5a   :  { %525 = vmatprep.mubr.f32.mxu1 %v120_v18 }
  0x5b   :  { %396 = vmatmul.mubr.f32.gmra.mxu0 %v117_v17 }
  0x5c   :  { %400 = vmatprep.mubr.f32.mxu0 %v125_v19 }
  0x5d   :  { %526 = vmatmul.mubr.f32.gmra.mxu1 %v119_v20 }
  0x5e   :  { %530 = vmatprep.mubr.f32.mxu1 %v127_v22 }
  0x5f   :  { %401 = vmatmul.mubr.f32.gmra.mxu0 %v124_v21 }
  0x60   :  { %600 = vmatprep.mubr.f32.mxu0 %v45_v23 }
  0x61   :  { %531 = vmatmul.mubr.f32.gmra.mxu1 %v126_v24 }
  0x62   :  { %1574 = vmatprep.mubr.msk.f32.mxu1 %vm1868_vm0, %v2869_v16 }
  0x63   :  { %601 = vmatmul.mubr.f32.vlgmr.msra.gmra.mxu0 %v44_v25 }
  0x64   :  { %605 = vmatprep.mubr.f32.mxu0 %v52_v26 }
  0x65   :  { %1575 = vmatmul.mubr.msk.f32.vlgmr.msra.gmra.mxu1 %vm236_vm1, %v46_v27 }
  0x66   :  { %1577 = vmatprep.mubr.msk.f32.mxu1 %vm1868_vm0, %v2869_v16 }
  0x67   :  { %606 = vmatmul.mubr.f32.gmra.mxu0 %v51_v28 }
  0x68   :  { %610 = vmatprep.mubr.f32.mxu0 %v59_v29 }
  0x69   :  { %1578 = vmatmul.mubr.msk.f32.gmra.mxu1 %vm236_vm1, %v53_v30 }
  0x6a   :  { %1580 = vmatprep.mubr.msk.f32.mxu1 %vm1868_vm0, %v2869_v16 }
  0x6b   :  { %611 = vmatmul.mubr.f32.gmra.mxu0 %v58_v31 }
  0x6c   :  { %615 = vmatprep.mubr.f32.mxu0 %v66_v32 }
  0x6d   :  { %1581 = vmatmul.mubr.msk.f32.gmra.mxu1 %vm236_vm1, %v60_v33 }
  0x6e   :  { %1583 = vmatprep.mubr.msk.f32.mxu1 %vm1868_vm0, %v2869_v16 }
  0x6f   :  { %616 = vmatmul.mubr.f32.gmra.mxu0 %v65_v34 }
  0x70   :  { %620 = vmatprep.mubr.f32.mxu0 %v73_v35 }
  0x71   :  { %1584 = vmatmul.mubr.msk.f32.gmra.mxu1 %vm236_vm1, %v67_v36 }
  0x72   :  { %1586 = vmatprep.mubr.msk.f32.mxu1 %vm1868_vm0, %v2869_v16 }
  0x73   :  { %621 = vmatmul.mubr.f32.gmra.mxu0 %v72_v37 }
  0x74   :  { %625 = vmatprep.mubr.f32.mxu0 %v80_v38 }
  0x75   :  { %1587 = vmatmul.mubr.msk.f32.gmra.mxu1 %vm236_vm1, %v74_v39 }
  0x76   :  { %1589 = vmatprep.mubr.msk.f32.mxu1 %vm1868_vm0, %v2869_v16 }
  0x77   :  { %626 = vmatmul.mubr.f32.gmra.mxu0 %v79_v40 }
  0x78   :  { %630 = vmatprep.mubr.f32.mxu0 %v87_v41 }
  0x79   :  { %1590 = vmatmul.mubr.msk.f32.gmra.mxu1 %vm236_vm1, %v81_v42 }
  0x7a   :  { %1592 = vmatprep.mubr.msk.f32.mxu1 %vm1868_vm0, %v2869_v16 }
  0x7b   :  { %631 = vmatmul.mubr.f32.gmra.mxu0 %v86_v43 }
  0x7c   :  { %635 = vmatprep.mubr.f32.mxu0 %v94_v44 }
  0x7d   :  { %1593 = vmatmul.mubr.msk.f32.gmra.mxu1 %vm236_vm1, %v88_v45 }
  0x7e   :  { %1595 = vmatprep.mubr.msk.f32.mxu1 %vm1868_vm0, %v2869_v16 }
  0x7f   :  { %636 = vmatmul.mubr.f32.gmra.mxu0 %v93_v46 }
  0x80   :  { %640 = vmatprep.mubr.f32.mxu0 %v101_v47 }
  0x81   :  { %1596 = vmatmul.mubr.msk.f32.gmra.mxu1 %vm236_vm1, %v95_v48  ;;  %v2591_v48 = vld [vmem:[%s2863_s2] ss:$0 sm:$0xff]  ;;  %s2654_s2 = smov 0  }
  0x82   :  { %1598 = vmatprep.mubr.msk.f32.mxu1 %vm1868_vm0, %v2869_v16 }
  0x83   :  { %641 = vmatmul.mubr.f32.gmra.mxu0 %v100_v49 }
  0x84   :  { %645 = vmatprep.mubr.f32.mxu0 %v108_v50 }
  0x85   :  { %1599 = vmatmul.mubr.msk.f32.gmra.mxu1 %vm236_vm1, %v102_v51 }
  0x86   :  { %1601 = vmatprep.mubr.msk.f32.mxu1 %vm1868_vm0, %v2869_v16 }
  0x87   :  { %646 = vmatmul.mubr.f32.gmra.mxu0 %v107_v52 }
  0x88   :  { %650 = vmatprep.mubr.f32.mxu0 %v115_v53 }
  0x89   :  { %1602 = vmatmul.mubr.msk.f32.gmra.mxu1 %vm236_vm1, %v109_v54 }
  0x8a   :  { %1604 = vmatprep.mubr.msk.f32.mxu1 %vm1868_vm0, %v2869_v16 }
  0x8b   :  { %651 = vmatmul.mubr.f32.gmra.mxu0 %v114_v55 }
  0x8c   :  { %655 = vmatprep.mubr.f32.mxu0 %v122_v56 }
  0x8d   :  { %1605 = vmatmul.mubr.msk.f32.gmra.mxu1 %vm236_vm1, %v116_v57 }
  0x8e   :  { %1607 = vmatprep.mubr.msk.f32.mxu1 %vm1868_vm0, %v2869_v16 }
  0x8f   :  { %656 = vmatmul.mubr.f32.gmra.mxu0 %v121_v58 }
  0x90   :  { %660 = vmatprep.mubr.f32.mxu0 %v129_v59 }
  0x91   :  { %1608 = vmatmul.mubr.msk.f32.gmra.mxu1 %vm236_vm1, %v123_v60 }
  0x92   :  { %1610 = vmatprep.mubr.msk.f32.mxu1 %vm1868_vm0, %v2869_v16 }
  0x93   :  { %661 = vmatmul.mubr.f32.gmra.mxu0 %v128_v61 }
  0x95   :  { %1611 = vmatmul.mubr.msk.f32.gmra.mxu1 %vm236_vm1, %v130_v62 }
  0xee   :  { %v1316_v63 = vpop.f32.mrf.mxu0 }
  0xf0   :  { %v1317_v0 = vpop.f32.mrf.mxu0 }
  0xf1   :  { %v1387_v1 = vpop.f32.mrf.mxu1  ;;  %v1318_v46 = vadd.f32 %v1317_v0, %v1316_v63 }
  0xf3   :  { %v1319_v2 = vpop.f32.mrf.mxu0  ;;  %v1388_v3 = vpop.f32.mrf.mxu1  ;;  %v343_v53 = vadd.f32 %v1318_v46, %v2591_v48 }
  0xf4   :  { %v1389_v54 = vadd.f32 %v1388_v3, %v1387_v1 }
  0xf5   :  { %v1320_v4 = vpop.f32.mrf.mxu0  ;;  %v1390_v5 = vpop.f32.mrf.mxu1 }
  0xf6   :  { %v1321_v51 = vadd.f32 %v1320_v4, %v1319_v2  ;;  %v473_v61 = vadd.f32 %v1389_v54, %v343_v53 }
  0xf7   :  { %v1322_v6 = vpop.f32.mrf.mxu0  ;;  %v1391_v7 = vpop.f32.mrf.mxu1 }
  0xf8   :  { %v348_v58 = vadd.f32 %v1321_v51, %v2591_v48  ;;  %v1392_v59 = vadd.f32 %v1391_v7, %v1390_v5 }
  0xf9   :  { %v1323_v8 = vpop.f32.mrf.mxu0  ;;  %v1393_v9 = vpop.f32.mrf.mxu1 }
  0xfa   :  { %v1324_v62 = vadd.f32 %v1323_v8, %v1322_v6 }
  0xfb   :  { %v1325_v10 = vpop.f32.mrf.mxu0  ;;  %v1394_v11 = vpop.f32.mrf.mxu1 }
  0xfc   :  { %v353_v1 = vadd.f32 %v1324_v62, %v2591_v48  ;;  %v1395_v3 = vadd.f32 %v1394_v11, %v1393_v9 }
  0xfd   :  { %v1326_v12 = vpop.f32.mrf.mxu0  ;;  %v2522_v13 = vpop.f32.mrf.mxu1 }
  0xfe   :  { %v483_v53 = vadd.f32 %v1395_v3, %v353_v1 }
  0xff   :  { %v2524_v14 = vpop.f32.mrf.mxu0  ;;  %v2526_v15 = vpop.f32.mrf.mxu1 }
 0x100   :  { %v1398_v8 = vadd.f32 %v2526_v15, %v2522_v13 }
 0x101   :  { %v2528_v17 = vpop.f32.mrf.mxu0  ;;  %v2530_v18 = vpop.f32.mrf.mxu1 }
 0x103   :  { %v2532_v19 = vpop.f32.mrf.mxu0  ;;  %v2534_v20 = vpop.f32.mrf.mxu1 }
 0x105   :  { %v2536_v21 = vpop.f32.mrf.mxu0  ;;  %v2538_v22 = vpop.f32.mrf.mxu1 }
 0x106   :  { %v1333_v13 = vadd.f32 %v2536_v21, %v2532_v19 }
 0x107   :  { %v2540_v23 = vpop.f32.mrf.mxu0  ;;  %v2542_v24 = vpop.f32.mrf.mxu1 }
 0x109   :  { %v2544_v25 = vpop.f32.mrf.mxu0  ;;  %v2546_v26 = vpop.f32.mrf.mxu1 }
 0x10a   :  { %v1336_v19 = vadd.f32 %v2544_v25, %v2540_v23 }
 0x10b   :  { %v2548_v27 = vpop.f32.mrf.mxu0  ;;  %v2550_v28 = vpop.f32.mrf.mxu1 }
 0x10c   :  { %v1407_v23 = vadd.f32 %v2550_v28, %v2546_v26 }
 0x10d   :  { %v2552_v29 = vpop.f32.mrf.mxu0  ;;  %v2554_v30 = vpop.f32.mrf.mxu1 }
 0x10f   :  { %v2556_v31 = vpop.f32.mrf.mxu0  ;;  %v2558_v32 = vpop.f32.mrf.mxu1 }
 0x111   :  { %v2560_v33 = vpop.f32.mrf.mxu0  ;;  %v2562_v34 = vpop.f32.mrf.mxu1 }
 0x113   :  { %v2564_v35 = vpop.f32.mrf.mxu0  ;;  %v2566_v36 = vpop.f32.mrf.mxu1 }
 0x115   :  { %v2568_v37 = vpop.f32.mrf.mxu0  ;;  %v2570_v38 = vpop.f32.mrf.mxu1 }
 0x117   :  { %v2572_v39 = vpop.f32.mrf.mxu0  ;;  %v2574_v40 = vpop.f32.mrf.mxu1 }
 0x119   :  { %v2576_v41 = vpop.f32.mrf.mxu0  ;;  %v2578_v42 = vpop.f32.mrf.mxu1 }
 0x11b   :  { %v2580_v43 = vpop.f32.mrf.mxu0  ;;  %v2582_v44 = vpop.f32.mrf.mxu1 }
 0x11d   :  { %v2584_v45 = vpop.f32.mrf.mxu0  ;;  %v2586_v47 = vpop.f32.mrf.mxu1 }
 0x11e   :  { %2871 = vst [vmem:[#allocation6_spill] sm:$0xff] %v2586_v47 }
 0x11f   :  { %v2593_v49 = vpop.f32.mrf.mxu0  ;;  %v2595_v50 = vpop.f32.mrf.mxu1 }
 0x120   :  { %2872 = vst [vmem:[#allocation7_spill] sm:$0xff] %v2593_v49  ;;  %2873 = vst [vmem:[#allocation8_spill] sm:$0xff] %v2595_v50  ;;  %v1327_v49 = vadd.f32 %v1326_v12, %v1325_v10  ;;  %v1330_v10 = vadd.f32 %v2528_v17, %v2524_v14  ;;  %v1401_v14 = vadd.f32 %v2534_v20, %v2530_v18 }
 0x121   :  { %v2597_v52 = vpop.f32.mrf.mxu0  ;;  %v2600_v55 = vpop.f32.mrf.mxu1 }
 0x122   :  { %2874 = vst [vmem:[#allocation9_spill] sm:$0xff] %v2597_v52  ;;  %2875 = vst [vmem:[#allocation10_spill] sm:$0xff] %v2600_v55  ;;  %v478_v52 = vadd.f32 %v1392_v59, %v348_v58  ;;  %v358_v6 = vadd.f32 %v1327_v49, %v2591_v48  ;;  %v363_v49 = vadd.f32 %v1330_v10, %v2591_v48 }
 0x123   :  { %v1458_v56 = vpop.f32.mrf.mxu0  ;;  %v2602_v57 = vpop.f32.mrf.mxu1 }
 0x124   :  { %2876 = vst [vmem:[#allocation11_spill] sm:$0xff] %v2602_v57  ;;  %v488_v59 = vadd.f32 %v1398_v8, %v358_v6  ;;  %v493_v18 = vadd.f32 %v1401_v14, %v363_v49  ;;  %v373_v8 = vadd.f32 %v1336_v19, %v2591_v48  ;;  %v1416_v19 = vadd.f32 %v2574_v40, %v2570_v38 }
 0x125   :  { %v1459_v60 = vpop.f32.mrf.mxu0  ;;  %v732_v0 = vpop.f32.mrf.mxu1  ;;  %v1351_v38 = vadd.f32 %v2584_v45, %v2580_v43 }
 0x126   :  { %v1460_v63 = vadd.f32 %v1459_v60, %v1458_v56  ;;  %v503_v26 = vadd.f32 %v1407_v23, %v373_v8 }
 0x127   :  { %v1461_v16 = vpop.f32.mrf.mxu0  ;;  %v1576_v4 = vpop.f32.mrf.mxu1  ;;  %v2879_v43 = vld [vmem:[#allocation7_spill] sm:$0xff] }
 0x128   :  { %v603_v2 = vadd.f32 %v1460_v63, %v473_v61 }
 0x129   :  { %v1462_v46 = vpop.f32.mrf.mxu0  ;;  %v737_v57 = vpop.f32.mrf.mxu1  ;;  %v2880_v45 = vld [vmem:[#allocation9_spill] sm:$0xff] }
 0x12a   :  { %v733_v55 = vadd.f32 %v732_v0, %v603_v2  ;;  %v1463_v50 = vadd.f32 %v1462_v46, %v1461_v16  ;;  %v368_v0 = vadd.f32 %v1333_v13, %v2591_v48  ;;  %v1404_v2 = vadd.f32 %v2542_v24, %v2538_v22 }
 0x12b   :  { %v1464_v47 = vpop.f32.mrf.mxu0  ;;  %v1579_v51 = vpop.f32.mrf.mxu1  ;;  %v1339_v22 = vadd.f32 %v2552_v29, %v2548_v27  ;;  %v1342_v27 = vadd.f32 %v2560_v33, %v2556_v31  ;;  %v1413_v31 = vadd.f32 %v2566_v36, %v2562_v34 }
 0x12c   :  { %vm796_vm2 = vcmp.ge.f32.partialorder %v733_v55, 0.0  ;;  %v809_v5 = vmul.f32 0.01, %v733_v55  ;;  %v608_v7 = vadd.f32 %v1463_v50, %v478_v52  ;;  %v498_v6 = vadd.f32 %v1404_v2, %v368_v0 }
 0x12d   :  { %v1465_v12 = vpop.f32.mrf.mxu0  ;;  %v742_v16 = vpop.f32.mrf.mxu1 }
 0x12e   :  { %v822_v54 = vsel %vm796_vm2, %v733_v55, %v809_v5  ;;  %v738_v9 = vadd.f32 %v737_v57, %v608_v7  ;;  %v1466_v11 = vadd.f32 %v1465_v12, %v1464_v47 }
 0x12f   :  { %835 = vst [vmem:[#allocation2 + $0x30] sm:$0xff] %v822_v54  ;;  %v1467_v56 = vpop.f32.mrf.mxu0  ;;  %v1582_v52 = vpop.f32.mrf.mxu1 }
 0x130   :  { %vm797_vm3 = vcmp.ge.f32.partialorder %v738_v9, 0.0  ;;  %v810_v58 = vmul.f32 0.01, %v738_v9  ;;  %v613_v50 = vadd.f32 %v1466_v11, %v483_v53 }
 0x131   :  { %v1468_v15 = vpop.f32.mrf.mxu0  ;;  %v747_v57 = vpop.f32.mrf.mxu1 }
 0x132   :  { %v823_v17 = vsel %vm797_vm3, %v738_v9, %v810_v58  ;;  %v743_v55 = vadd.f32 %v742_v16, %v613_v50  ;;  %v1469_v47 = vadd.f32 %v1468_v15, %v1467_v56  ;;  %v378_v56 = vadd.f32 %v1339_v22, %v2591_v48 }
 0x133   :  { %836 = vst [vmem:[#allocation2] sm:$0xff] %v823_v17  ;;  %v1470_v60 = vpop.f32.mrf.mxu0  ;;  %v1585_v63 = vpop.f32.mrf.mxu1  ;;  %v1410_v58 = vadd.f32 %v2558_v32, %v2554_v30  ;;  %v1345_v30 = vadd.f32 %v2568_v37, %v2564_v35  ;;  %v1348_v35 = vadd.f32 %v2576_v41, %v2572_v39  ;;  %v1419_v39 = vadd.f32 %v2582_v44, %v2578_v42 }
 0x134   :  { %vm798_vm4 = vcmp.ge.f32.partialorder %v743_v55, 0.0  ;;  %v811_v61 = vmul.f32 0.01, %v743_v55  ;;  %v618_v62 = vadd.f32 %v1469_v47, %v488_v59 }
 0x135   :  { %v1471_v21 = vpop.f32.mrf.mxu0  ;;  %v752_v1 = vpop.f32.mrf.mxu1  ;;  %v508_v17 = vadd.f32 %v1410_v58, %v378_v56  ;;  %v388_v2 = vadd.f32 %v1345_v30, %v2591_v48 }
 0x136   :  { %v824_v20 = vsel %vm798_vm4, %v743_v55, %v811_v61  ;;  %v748_v4 = vadd.f32 %v747_v57, %v618_v62  ;;  %v1472_v46 = vadd.f32 %v1471_v21, %v1470_v60  ;;  %v383_v55 = vadd.f32 %v1342_v27, %v2591_v48 }
 0x137   :  { %837 = vst [vmem:[#allocation2 + $0x58] sm:$0xff] %v824_v20  ;;  %v1473_v3 = vpop.f32.mrf.mxu0  ;;  %v1588_v51 = vpop.f32.mrf.mxu1 }
 0x138   :  { %vm799_vm5 = vcmp.ge.f32.partialorder %v748_v4, 0.0  ;;  %v812_v5 = vmul.f32 0.01, %v748_v4  ;;  %v623_v7 = vadd.f32 %v1472_v46, %v493_v18  ;;  %v513_v34 = vadd.f32 %v1413_v31, %v383_v55 }
 0x139   :  { %v1474_v24 = vpop.f32.mrf.mxu0  ;;  %v757_v53 = vpop.f32.mrf.mxu1 }
 0x13a   :  { %v825_v25 = vsel %vm799_vm5, %v748_v4, %v812_v5  ;;  %v753_v10 = vadd.f32 %v752_v1, %v623_v7  ;;  %v1475_v12 = vadd.f32 %v1474_v24, %v1473_v3  ;;  %v518_v5 = vadd.f32 %v1416_v19, %v388_v2 }
 0x13b   :  { %838 = vst [vmem:[#allocation2 + $0x18] sm:$0xff] %v825_v25  ;;  %v1476_v54 = vpop.f32.mrf.mxu0  ;;  %v1591_v16 = vpop.f32.mrf.mxu1  ;;  %v393_v7 = vadd.f32 %v1348_v35, %v2591_v48 }
 0x13c   :  { %vm800_vm6 = vcmp.ge.f32.partialorder %v753_v10, 0.0  ;;  %v813_v9 = vmul.f32 0.01, %v753_v10  ;;  %v628_v11 = vadd.f32 %v1475_v12, %v498_v6  ;;  %v2877_v12 = vld [vmem:[#allocation6_spill] sm:$0xff] }
 0x13d   :  { %v1477_v29 = vpop.f32.mrf.mxu0  ;;  %v762_v59 = vpop.f32.mrf.mxu1  ;;  %v523_v42 = vadd.f32 %v1419_v39, %v393_v7 }
 0x13e   :  { %v826_v28 = vsel %vm800_vm6, %v753_v10, %v813_v9  ;;  %v758_v50 = vadd.f32 %v757_v53, %v628_v11  ;;  %v1478_v52 = vadd.f32 %v1477_v29, %v1476_v54  ;;  %v398_v10 = vadd.f32 %v1351_v38, %v2591_v48  ;;  %v2878_v53 = vld [vmem:[#allocation8_spill] sm:$0xff] }
 0x13f   :  { %839 = vst [vmem:[#allocation2 + $0x50] sm:$0xff] %v826_v28  ;;  %v1479_v49 = vpop.f32.mrf.mxu0  ;;  %v1594_v14 = vpop.f32.mrf.mxu1  ;;  %v1422_v54 = vadd.f32 %v2878_v53, %v2877_v12  ;;  %v1354_v9 = vadd.f32 %v2880_v45, %v2879_v43 }
 0x140   :  { %vm801_vm7 = vcmp.ge.f32.partialorder %v758_v50, 0.0  ;;  %v814_v13 = vmul.f32 0.01, %v758_v50  ;;  %v633_v15 = vadd.f32 %v1478_v52, %v503_v26 }
 0x141   :  { %v1480_v32 = vpop.f32.mrf.mxu0  ;;  %v767_v60 = vpop.f32.mrf.mxu1  ;;  %v403_v52 = vadd.f32 %v1354_v9, %v2591_v48 }
 0x142   :  { %v827_v33 = vsel %vm801_vm7, %v758_v50, %v814_v13  ;;  %v763_v47 = vadd.f32 %v762_v59, %v633_v15  ;;  %v1481_v57 = vadd.f32 %v1480_v32, %v1479_v49  ;;  %v528_v50 = vadd.f32 %v1422_v54, %v398_v10  ;;  %v2881_v49 = vld [vmem:[#allocation10_spill] sm:$0xff]  ;;  %v2882_v13 = vld [vmem:[#allocation11_spill] sm:$0xff] }
 0x143   :  { %840 = vst [vmem:[#allocation2 + $0x20] sm:$0xff] %v827_v33  ;;  %v1482_v61 = vpop.f32.mrf.mxu0  ;;  %v1597_v0 = vpop.f32.mrf.mxu1  ;;  %v1425_v15 = vadd.f32 %v2882_v13, %v2881_v49 }
 0x144   :  { %vm802_vm8 = vcmp.ge.f32.partialorder %v763_v47, 0.0  ;;  %v815_v62 = vmul.f32 0.01, %v763_v47  ;;  %v638_v63 = vadd.f32 %v1481_v57, %v508_v17 }
 0x145   :  { %v1483_v37 = vpop.f32.mrf.mxu0  ;;  %v772_v20 = vpop.f32.mrf.mxu1 }
 0x146   :  { %v828_v36 = vsel %vm802_vm8, %v763_v47, %v815_v62  ;;  %v768_v21 = vadd.f32 %v767_v60, %v638_v63  ;;  %v1484_v18 = vadd.f32 %v1483_v37, %v1482_v61  ;;  %v533_v60 = vadd.f32 %v1425_v15, %v403_v52 }
 0x147   :  { %841 = vst [vmem:[#allocation2 + $0x8] sm:$0xff] %v828_v36  ;;  %v1485_v4 = vpop.f32.mrf.mxu0  ;;  %v1600_v3 = vpop.f32.mrf.mxu1 }
 0x148   :  { %vm803_vm9 = vcmp.ge.f32.partialorder %v768_v21, 0.0  ;;  %v816_v46 = vmul.f32 0.01, %v768_v21  ;;  %v643_v1 = vadd.f32 %v1484_v18, %v513_v34 }
 0x149   :  { %v1486_v40 = vpop.f32.mrf.mxu0  ;;  %v777_v8 = vpop.f32.mrf.mxu1 }
 0x14a   :  { %v829_v41 = vsel %vm803_vm9, %v768_v21, %v816_v46  ;;  %v773_v51 = vadd.f32 %v772_v20, %v643_v1  ;;  %v1487_v6 = vadd.f32 %v1486_v40, %v1485_v4 }
 0x14b   :  { %842 = vst [vmem:[#allocation2 + $0x38] sm:$0xff] %v829_v41  ;;  %v1488_v22 = vpop.f32.mrf.mxu0  ;;  %v1603_v25 = vpop.f32.mrf.mxu1 }
 0x14c   :  { %vm804_vm10 = vcmp.ge.f32.partialorder %v773_v51, 0.0  ;;  %v817_v24 = vmul.f32 0.01, %v773_v51  ;;  %v648_v23 = vadd.f32 %v1487_v6, %v518_v5 }
 0x14d   :  { %v1489_v11 = vpop.f32.mrf.mxu0  ;;  %v782_v58 = vpop.f32.mrf.mxu1 }
 0x14e   :  { %v830_v44 = vsel %vm804_vm10, %v773_v51, %v817_v24  ;;  %v778_v16 = vadd.f32 %v777_v8, %v648_v23  ;;  %v1490_v56 = vadd.f32 %v1489_v11, %v1488_v22 }
 0x14f   :  { %843 = vst [vmem:[#allocation2 + $0x28] sm:$0xff] %v830_v44  ;;  %v1491_v27 = vpop.f32.mrf.mxu0  ;;  %v1606_v28 = vpop.f32.mrf.mxu1 }
 0x150   :  { %vm805_vm11 = vcmp.ge.f32.partialorder %v778_v16, 0.0  ;;  %v818_v29 = vmul.f32 0.01, %v778_v16  ;;  %v653_v26 = vadd.f32 %v1490_v56, %v523_v42 }
 0x151   :  { %v1492_v59 = vpop.f32.mrf.mxu0  ;;  %v787_v30 = vpop.f32.mrf.mxu1 }
 0x152   :  { %v831_v14 = vsel %vm805_vm11, %v778_v16, %v818_v29  ;;  %v783_v17 = vadd.f32 %v782_v58, %v653_v26  ;;  %v1493_v55 = vadd.f32 %v1492_v59, %v1491_v27 }
 0x153   :  { %844 = vst [vmem:[#allocation2 + $0x48] sm:$0xff] %v831_v14  ;;  %v1494_v32 = vpop.f32.mrf.mxu0  ;;  %v1609_v47 = vpop.f32.mrf.mxu1 }
 0x154   :  { %vm806_vm12 = vcmp.ge.f32.partialorder %v783_v17, 0.0  ;;  %v819_v31 = vmul.f32 0.01, %v783_v17  ;;  %v658_v33 = vadd.f32 %v1493_v55, %v528_v50 }
 0x155   :  { %v1495_v57 = vpop.f32.mrf.mxu0  ;;  %v792_v48 = vpop.f32.mrf.mxu1 }
 0x156   :  { %v832_v61 = vsel %vm806_vm12, %v783_v17, %v819_v31  ;;  %v788_v62 = vadd.f32 %v787_v30, %v658_v33  ;;  %v1496_v63 = vadd.f32 %v1495_v57, %v1494_v32 }
 0x157   :  { %845 = vst [vmem:[#allocation2 + $0x10] sm:$0xff] %v832_v61  ;;  %v1612_v19 = vpop.f32.mrf.mxu1 }
 0x158   :  { %vm807_vm13 = vcmp.ge.f32.partialorder %v788_v62, 0.0  ;;  %v820_v0 = vmul.f32 0.01, %v788_v62  ;;  %v663_v2 = vadd.f32 %v1496_v63, %v533_v60 }
 0x15a   :  { %v833_v35 = vsel %vm807_vm13, %v788_v62, %v820_v0  ;;  %v793_v37 = vadd.f32 %v792_v48, %v663_v2 }
 0x15b   :  { %846 = vst [vmem:[#allocation2 + $0x60] sm:$0xff] %v833_v35 }
 0x15c   :  { %vm808_vm14 = vcmp.ge.f32.partialorder %v793_v37, 0.0  ;;  %v821_v34 = vmul.f32 0.01, %v793_v37 }
 0x15e   :  { %v834_v36 = vsel %vm808_vm14, %v793_v37, %v821_v34 }
 0x15f   :  { %847 = vst [vmem:[#allocation2 + $0x40] sm:$0xff] %v834_v36 }
 0x160 LB: > { %v1869_v21 = vmov 0.0   ;;  %s1281_s22 = sshll.u32 %s1862_s2, 7  ;;  %vm1870_vm15 = vmmov 0   ;;  %v854_v24 = vld [vmem:[#allocation2 + $0x30] sm:$0xff]  ;;  %v861_v23 = vld [vmem:[#allocation2 + $0x38] sm:$0xff]  ;;  %v855_v25 = vld [vmem:[#allocation2] sm:$0xff]  ;;  %s885_s28 = scalar_lea.vmem %s2865_s4, %s1862_s2  ;;  %s1862_s2 = sphi %s2654_s2, %s853_s2  }
 0x161   : > { %1613 = vmatprep.subr.mxu0 %v1869_v21  ;;  %1755 = vmatprep.subr.mxu1 %v1869_v21  ;;  %s2669_s25 = scalar_lea.vmem %s2864_s3, %s1281_s22  ;;  %v862_v10 = vld [vmem:[#allocation2 + $0x28] sm:$0xff]  ;;  %v856_v12 = vld [vmem:[#allocation2 + $0x58] sm:$0xff]  ;;  %v864_v43 = vld [vmem:[#allocation2 + $0x10] sm:$0xff]  ;;  %s853_s2 = sadd.s32 1, %s1862_s2  }
 0x162   : > { %1645 = vmatprep.mubr.msk.f32.mxu0 %vm1870_vm15, %v1869_v21  ;;  %1666 = vmatprep.mubr.msk.f32.mxu1 %vm1870_vm15, %v1869_v21  ;;  %v884_v18 = vld [vmem:[%s2669_s25 + $0x78] sm:$0xff]  ;;  %v883_v20 = vld [vmem:[%s2669_s25 + $0x70] sm:$0xff]  ;;  %v882_v4 = vld [vmem:[%s2669_s25 + $0x68] sm:$0xff]  ;;  %p850_p5 = scmp.ge.s32.totalorder %s853_s2, 5  }
 0x163   : > { %1614 = vmatpush3.msra.mxu0 %v884_v18  ;;  %1771 = vmatpush3.msra.mxu1 %v884_v18  ;;  %v881_v46 = vld [vmem:[%s2669_s25 + $0x60] sm:$0xff]  ;;  %v880_v1 = vld [vmem:[%s2669_s25 + $0x58] sm:$0xff]  ;;  %v879_v3 = vld [vmem:[%s2669_s25 + $0x50] sm:$0xff] }
 0x164   : > { %1615 = vmatprep.subr.mxu0 %v1869_v21  ;;  %1756 = vmatprep.subr.mxu1 %v1869_v21  ;;  %v878_v5 = vld [vmem:[%s2669_s25 + $0x48] sm:$0xff]  ;;  %v877_v7 = vld [vmem:[%s2669_s25 + $0x40] sm:$0xff]  ;;  %v876_v38 = vld [vmem:[%s2669_s25 + $0x38] sm:$0xff] }
 0x165   : > { %1616 = vmatpush3.msra.mxu0 %v883_v20  ;;  %1772 = vmatpush3.msra.mxu1 %v883_v20  ;;  %v875_v40 = vld [vmem:[%s2669_s25 + $0x30] sm:$0xff]  ;;  %v874_v39 = vld [vmem:[%s2669_s25 + $0x28] sm:$0xff]  ;;  %v873_v41 = vld [vmem:[%s2669_s25 + $0x20] sm:$0xff] }
 0x166   : > { %1617 = vmatprep.subr.mxu0 %v1869_v21  ;;  %1757 = vmatprep.subr.mxu1 %v1869_v21  ;;  %v872_v51 = vld [vmem:[%s2669_s25 + $0x18] sm:$0xff]  ;;  %v871_v6 = vld [vmem:[%s2669_s25 + $0x10] sm:$0xff]  ;;  %v870_v8 = vld [vmem:[%s2669_s25 + $0x8] sm:$0xff] }
 0x167   : > { %1618 = vmatpush3.msra.mxu0 %v882_v4  ;;  %1773 = vmatpush3.msra.mxu1 %v882_v4  ;;  %v869_v22 = vld [vmem:[%s2669_s25] sm:$0xff]  ;;  %v863_v53 = vld [vmem:[#allocation2 + $0x48] sm:$0xff]  ;;  %v857_v54 = vld [vmem:[#allocation2 + $0x18] sm:$0xff] }
 0x168   : > { %1619 = vmatprep.subr.mxu0 %v1869_v21  ;;  %1758 = vmatprep.subr.mxu1 %v1869_v21  ;;  %v858_v45 = vld [vmem:[#allocation2 + $0x50] sm:$0xff]  ;;  %v865_v9 = vld [vmem:[#allocation2 + $0x60] sm:$0xff]  ;;  %v860_v44 = vld [vmem:[#allocation2 + $0x8] sm:$0xff] }
 0x169   : > { %1620 = vmatpush3.msra.mxu0 %v881_v46  ;;  %1774 = vmatpush3.msra.mxu1 %v881_v46  ;;  %v859_v11 = vld [vmem:[#allocation2 + $0x20] sm:$0xff] }
 0x16a   : > { %1621 = vmatprep.subr.mxu0 %v1869_v21  ;;  %1759 = vmatprep.subr.mxu1 %v1869_v21  ;;  %v866_v42 = vld [vmem:[#allocation2 + $0x40] sm:$0xff] }
 0x16b   : > { %1622 = vmatpush3.msra.mxu0 %v880_v1  ;;  %1775 = vmatpush3.msra.mxu1 %v880_v1  ;;  %v2743_v16 = vld [vmem:[%s885_s28] ss:$0 sm:$0xff] }
 0x16c   : > { %1623 = vmatprep.subr.mxu0 %v1869_v21  ;;  %1760 = vmatprep.subr.mxu1 %v1869_v21 }
 0x16d   : > { %1624 = vmatpush3.msra.mxu0 %v879_v3  ;;  %1776 = vmatpush3.msra.mxu1 %v879_v3 }
 0x16e   : > { %1625 = vmatprep.subr.mxu0 %v1869_v21  ;;  %1761 = vmatprep.subr.mxu1 %v1869_v21 }
 0x16f   : > { %1626 = vmatpush3.msra.mxu0 %v878_v5  ;;  %1777 = vmatpush3.msra.mxu1 %v878_v5 }
 0x170   : > { %1627 = vmatprep.subr.mxu0 %v1869_v21  ;;  %1762 = vmatprep.subr.mxu1 %v1869_v21 }
 0x171   : > { %1628 = vmatpush3.msra.mxu0 %v877_v7  ;;  %1778 = vmatpush3.msra.mxu1 %v877_v7 }
 0x172   : > { %1629 = vmatprep.subr.mxu0 %v1869_v21  ;;  %1763 = vmatprep.subr.mxu1 %v1869_v21 }
 0x173   : > { %1630 = vmatpush3.msra.mxu0 %v876_v38  ;;  %1779 = vmatpush3.msra.mxu1 %v876_v38 }
 0x174   : > { %1631 = vmatprep.subr.mxu0 %v1869_v21  ;;  %1764 = vmatprep.subr.mxu1 %v1869_v21 }
 0x175   : > { %1632 = vmatpush3.msra.mxu0 %v875_v40  ;;  %1780 = vmatpush3.msra.mxu1 %v875_v40 }
 0x176   : > { %1633 = vmatprep.subr.mxu0 %v1869_v21  ;;  %1765 = vmatprep.subr.mxu1 %v1869_v21 }
 0x177   : > { %1634 = vmatpush3.msra.mxu0 %v874_v39  ;;  %1781 = vmatpush3.msra.mxu1 %v874_v39 }
 0x178   : > { %1635 = vmatprep.subr.mxu0 %v1869_v21  ;;  %1766 = vmatprep.subr.mxu1 %v1869_v21 }
 0x179   : > { %1636 = vmatpush3.msra.mxu0 %v873_v41  ;;  %1782 = vmatpush3.msra.mxu1 %v873_v41 }
 0x17a   : > { %1637 = vmatprep.subr.mxu0 %v1869_v21  ;;  %1767 = vmatprep.subr.mxu1 %v1869_v21 }
 0x17b   : > { %1638 = vmatpush3.msra.mxu0 %v872_v51  ;;  %1783 = vmatpush3.msra.mxu1 %v872_v51 }
 0x17c   : > { %1639 = vmatprep.subr.mxu0 %v1869_v21  ;;  %1768 = vmatprep.subr.mxu1 %v1869_v21 }
 0x17d   : > { %1640 = vmatpush3.msra.mxu0 %v871_v6  ;;  %1784 = vmatpush3.msra.mxu1 %v871_v6 }
 0x17e   : > { %1641 = vmatprep.subr.mxu0 %v1869_v21  ;;  %1769 = vmatprep.subr.mxu1 %v1869_v21 }
 0x17f   : > { %1642 = vmatpush3.msra.mxu0 %v870_v8  ;;  %1785 = vmatpush3.msra.mxu1 %v870_v8 }
 0x180   : > { %1643 = vmatprep.subr.mxu0 %v1869_v21  ;;  %1770 = vmatprep.subr.mxu1 %v1869_v21 }
 0x181   : > { %1644 = vmatpush3.msra.mxu0 %v869_v22  ;;  %1786 = vmatpush3.msra.mxu1 %v869_v22 }
 0x182   : > { %1646 = vmatmul.mubr.f32.vlgmr.msra.gmra.mxu0 %v854_v24  ;;  %1667 = vmatmul.mubr.f32.vlgmr.msra.gmra.mxu1 %v861_v23 }
 0x183   : > { %1648 = vmatprep.mubr.msk.f32.mxu0 %vm1870_vm15, %v1869_v21  ;;  %1669 = vmatprep.mubr.msk.f32.mxu1 %vm1870_vm15, %v1869_v21 }
 0x186   : > { %1649 = vmatmul.mubr.f32.gmra.mxu0 %v855_v25  ;;  %1670 = vmatmul.mubr.f32.gmra.mxu1 %v862_v10 }
 0x187   : > { %1651 = vmatprep.mubr.msk.f32.mxu0 %vm1870_vm15, %v1869_v21  ;;  %1672 = vmatprep.mubr.msk.f32.mxu1 %vm1870_vm15, %v1869_v21 }
 0x18a   : > { %1652 = vmatmul.mubr.f32.gmra.mxu0 %v856_v12  ;;  %1673 = vmatmul.mubr.f32.gmra.mxu1 %v863_v53 }
 0x18b   : > { %1654 = vmatprep.mubr.msk.f32.mxu0 %vm1870_vm15, %v1869_v21  ;;  %1675 = vmatprep.mubr.msk.f32.mxu1 %vm1870_vm15, %v1869_v21 }
 0x18e   : > { %1655 = vmatmul.mubr.f32.gmra.mxu0 %v857_v54  ;;  %1676 = vmatmul.mubr.f32.gmra.mxu1 %v864_v43 }
 0x18f   : > { %1657 = vmatprep.mubr.msk.f32.mxu0 %vm1870_vm15, %v1869_v21  ;;  %1678 = vmatprep.mubr.msk.f32.mxu1 %vm1870_vm15, %v1869_v21 }
 0x192   : > { %1658 = vmatmul.mubr.f32.gmra.mxu0 %v858_v45  ;;  %1679 = vmatmul.mubr.f32.gmra.mxu1 %v865_v9 }
 0x193   : > { %1660 = vmatprep.mubr.msk.f32.mxu0 %vm1870_vm15, %v1869_v21  ;;  %1681 = vmatprep.mubr.msk.f32.mxu1 %vm1870_vm15, %v1869_v21 }
 0x196   : > { %1661 = vmatmul.mubr.f32.gmra.mxu0 %v859_v11  ;;  %1682 = vmatmul.mubr.f32.gmra.mxu1 %v866_v42 }
 0x197   : > { %1663 = vmatprep.mubr.msk.f32.mxu0 %vm1870_vm15, %v1869_v21 }
 0x19a   : > { %1664 = vmatmul.mubr.f32.gmra.mxu0 %v860_v44 }
 0x242   : > { %v959_v56 = vpop.f32.mrf.mxu0  ;;  %v994_v58 = vpop.f32.mrf.mxu1 }
 0x243   : > { %v960_v27 = vadd.f32 %v2743_v16, %v959_v56  ;;  %v995_v29 = vadd.f32 %v2743_v16, %v994_v58 }
 0x244   : > { %v1647_v26 = vpop.f32.mrf.mxu0  ;;  %v1668_v28 = vpop.f32.mrf.mxu1 }
 0x245   : > { %vm1023_vm1 = vcmp.ge.f32.partialorder %v960_v27, 0.0  ;;  %v1036_v50 = vmul.f32 0.01, %v960_v27  ;;  %vm1030_vm2 = vcmp.ge.f32.partialorder %v995_v29, 0.0  ;;  %v1043_v52 = vmul.f32 0.01, %v995_v29 }
 0x246   : > { %v964_v59 = vpop.f32.mrf.mxu0  ;;  %v999_v49 = vpop.f32.mrf.mxu1  ;;  %v1102_v26 = vld [vmem:[#allocation3 + $0x70] sm:$0xff] (%p850_p5)  ;;  %v1100_v28 = vld [vmem:[#allocation3 + $0x60] sm:$0xff] (%p850_p5) }
 0x247   : > { %v1049_v13 = vsel %vm1023_vm1, %v960_v27, %v1036_v50  ;;  %v1056_v15 = vsel %vm1030_vm2, %v995_v29, %v1043_v52  ;;  %v965_v14 = vadd.f32 %v2743_v16, %v964_v59  ;;  %v1000_v17 = vadd.f32 %v2743_v16, %v999_v49  ;;  %v1103_v29 = vld [vmem:[#allocation3 + $0x78] sm:$0xff] (%p850_p5)  ;;  %v1098_v52 = vld [vmem:[#allocation3 + $0x50] sm:$0xff] (%p850_p5)  ;;  %v1097_v59 = vld [vmem:[#allocation3 + $0x48] sm:$0xff] (%p850_p5) }
 0x248   : > { %1062 = vst [vmem:[#allocation2 + $0x30] sm:$0xff] %v1049_v13  ;;  %1069 = vst [vmem:[#allocation2 + $0x38] sm:$0xff] %v1056_v15  ;;  %v1650_v55 = vpop.f32.mrf.mxu0  ;;  %v1671_v30 = vpop.f32.mrf.mxu1  ;;  %v2883_v27 = vmov (%p850_p5), 0.0   ;;  %v1099_v50 = vld [vmem:[#allocation3 + $0x58] sm:$0xff] (%p850_p5)  ;;  %v1096_v49 = vld [vmem:[#allocation3 + $0x40] sm:$0xff] (%p850_p5) }
 0x249   : > { %vm1024_vm3 = vcmp.ge.f32.partialorder %v965_v14, 0.0  ;;  %v1037_v32 = vmul.f32 0.01, %v965_v14  ;;  %vm1031_vm4 = vcmp.ge.f32.partialorder %v1000_v17, 0.0  ;;  %v1044_v31 = vmul.f32 0.01, %v1000_v17  ;;  %1684 = vmatprep.subr.mxu0 (%p850_p5), %v2883_v27  ;;  %1787 = vmatprep.subr.mxu1 (%p850_p5), %v2883_v27 }
 0x24a   : > { %v969_v33 = vpop.f32.mrf.mxu0  ;;  %v1004_v47 = vpop.f32.mrf.mxu1  ;;  %1685 = vmatpush3.msra.mxu0 (%p850_p5), %v1103_v29  ;;  %1803 = vmatpush3.msra.mxu1 (%p850_p5), %v1103_v29  ;;  %v1095_v13 = vld [vmem:[#allocation3 + $0x38] sm:$0xff] (%p850_p5)  ;;  %v1094_v15 = vld [vmem:[#allocation3 + $0x30] sm:$0xff] (%p850_p5) }
 0x24b   : > { %v1050_v57 = vsel %vm1024_vm3, %v965_v14, %v1037_v32  ;;  %v1057_v60 = vsel %vm1031_vm4, %v1000_v17, %v1044_v31  ;;  %v970_v61 = vadd.f32 %v2743_v16, %v969_v33  ;;  %v1005_v62 = vadd.f32 %v2743_v16, %v1004_v47  ;;  %1686 = vmatprep.subr.mxu0 (%p850_p5), %v2883_v27  ;;  %v1093_v14 = vld [vmem:[#allocation3 + $0x28] sm:$0xff] (%p850_p5)  ;;  %v1092_v17 = vld [vmem:[#allocation3 + $0x20] sm:$0xff] (%p850_p5)  ;;  %v1091_v55 = vld [vmem:[#allocation3 + $0x18] sm:$0xff] (%p850_p5) }
 0x24c   : > { %1063 = vst [vmem:[#allocation2] sm:$0xff] %v1050_v57  ;;  %1070 = vst [vmem:[#allocation2 + $0x28] sm:$0xff] %v1057_v60  ;;  %v1653_v63 = vpop.f32.mrf.mxu0  ;;  %v1674_v48 = vpop.f32.mrf.mxu1  ;;  %1788 = vmatprep.subr.mxu1 (%p850_p5), %v2883_v27  ;;  %1687 = vmatpush3.msra.mxu0 (%p850_p5), %v1102_v26  ;;  %v1090_v30 = vld [vmem:[#allocation3 + $0x10] sm:$0xff] (%p850_p5)  ;;  %v1089_v32 = vld [vmem:[#allocation3 + $0x8] sm:$0xff] (%p850_p5) }
 0x24d   : > { %vm1025_vm5 = vcmp.ge.f32.partialorder %v970_v61, 0.0  ;;  %v1038_v0 = vmul.f32 0.01, %v970_v61  ;;  %vm1032_vm6 = vcmp.ge.f32.partialorder %v1005_v62, 0.0  ;;  %v1045_v2 = vmul.f32 0.01, %v1005_v62  ;;  %1804 = vmatpush3.msra.mxu1 (%p850_p5), %v1102_v26  ;;  %1688 = vmatprep.subr.mxu0 (%p850_p5), %v2883_v27 }
 0x24e   : > { %v974_v19 = vpop.f32.mrf.mxu0  ;;  %v1009_v35 = vpop.f32.mrf.mxu1  ;;  %1789 = vmatprep.subr.mxu1 (%p850_p5), %v2883_v27  ;;  %v1088_v31 = vld [vmem:[#allocation3] sm:$0xff] (%p850_p5)  ;;  %1716 = vmatprep.mubr.msk.f32.mxu0 (%p850_p5), %vm1868_vm0, %v2883_v27 }
 0x24f   : > { %v1051_v37 = vsel %vm1025_vm5, %v970_v61, %v1038_v0  ;;  %v1058_v34 = vsel %vm1032_vm6, %v1005_v62, %v1045_v2  ;;  %v975_v36 = vadd.f32 %v2743_v16, %v974_v19  ;;  %v1010_v21 = vadd.f32 %v2743_v16, %v1009_v35  ;;  %v1075_v33 = vld [vmem:[#allocation2 + $0x30] sm:$0xff] (%p850_p5)  ;;  %v1082_v47 = vld [vmem:[#allocation2 + $0x38] sm:$0xff] (%p850_p5)  ;;  %1737 = vmatprep.mubr.msk.f32.mxu1 (%p850_p5), %vm1868_vm0, %v2883_v27 }
 0x250   : > { %1064 = vst [vmem:[#allocation2 + $0x58] sm:$0xff] %v1051_v37  ;;  %1071 = vst [vmem:[#allocation2 + $0x48] sm:$0xff] %v1058_v34  ;;  %v1656_v18 = vpop.f32.mrf.mxu0  ;;  %v1677_v20 = vpop.f32.mrf.mxu1  ;;  %v1283_v34 = vld [vmem:[%s2867_s6] ss:$0 sm:$0xff] (%p850_p5) }
 0x251   : > { %vm1026_vm7 = vcmp.ge.f32.partialorder %v975_v36, 0.0  ;;  %v1039_v4 = vmul.f32 0.01, %v975_v36  ;;  %vm1033_vm8 = vcmp.ge.f32.partialorder %v1010_v21, 0.0  ;;  %v1046_v46 = vmul.f32 0.01, %v1010_v21 }
 0x252   : > { %v979_v1 = vpop.f32.mrf.mxu0  ;;  %v1014_v3 = vpop.f32.mrf.mxu1 }
 0x253   : > { %v1052_v5 = vsel %vm1026_vm7, %v975_v36, %v1039_v4  ;;  %v1059_v7 = vsel %vm1033_vm8, %v1010_v21, %v1046_v46  ;;  %v980_v38 = vadd.f32 %v2743_v16, %v979_v1  ;;  %v1015_v40 = vadd.f32 %v2743_v16, %v1014_v3  ;;  %v1076_v57 = vld [vmem:[#allocation2] sm:$0xff] (%p850_p5)  ;;  %v1083_v60 = vld [vmem:[#allocation2 + $0x28] sm:$0xff] (%p850_p5) }
 0x254   : > { %1065 = vst [vmem:[#allocation2 + $0x18] sm:$0xff] %v1052_v5  ;;  %1072 = vst [vmem:[#allocation2 + $0x10] sm:$0xff] %v1059_v7  ;;  %v1659_v39 = vpop.f32.mrf.mxu0  ;;  %v1680_v41 = vpop.f32.mrf.mxu1 }
 0x255   : > { %vm1027_vm9 = vcmp.ge.f32.partialorder %v980_v38, 0.0  ;;  %v1040_v51 = vmul.f32 0.01, %v980_v38  ;;  %vm1034_vm10 = vcmp.ge.f32.partialorder %v1015_v40, 0.0  ;;  %v1047_v6 = vmul.f32 0.01, %v1015_v40 }
 0x256   : > { %v984_v8 = vpop.f32.mrf.mxu0  ;;  %v1019_v22 = vpop.f32.mrf.mxu1 }
 0x257   : > { %v1053_v24 = vsel %vm1027_vm9, %v980_v38, %v1040_v51  ;;  %v1060_v23 = vsel %vm1034_vm10, %v1015_v40, %v1047_v6  ;;  %v985_v25 = vadd.f32 %v2743_v16, %v984_v8  ;;  %v1020_v10 = vadd.f32 %v2743_v16, %v1019_v22  ;;  %v1077_v61 = vld [vmem:[#allocation2 + $0x58] sm:$0xff] (%p850_p5)  ;;  %v1084_v62 = vld [vmem:[#allocation2 + $0x48] sm:$0xff] (%p850_p5) }
 0x258   : > { %1066 = vst [vmem:[#allocation2 + $0x50] sm:$0xff] %v1053_v24  ;;  %1073 = vst [vmem:[#allocation2 + $0x60] sm:$0xff] %v1060_v23  ;;  %v1662_v12 = vpop.f32.mrf.mxu0  ;;  %v1683_v53 = vpop.f32.mrf.mxu1 }
 0x259   : > { %vm1028_vm11 = vcmp.ge.f32.partialorder %v985_v25, 0.0  ;;  %v1041_v54 = vmul.f32 0.01, %v985_v25  ;;  %vm1035_vm12 = vcmp.ge.f32.partialorder %v1020_v10, 0.0  ;;  %v1048_v43 = vmul.f32 0.01, %v1020_v10 }
 0x25a   : > { %v989_v45 = vpop.f32.mrf.mxu0 }
 0x25b   : > { %v1054_v9 = vsel %vm1028_vm11, %v985_v25, %v1041_v54  ;;  %v1061_v11 = vsel %vm1035_vm12, %v1020_v10, %v1048_v43  ;;  %v990_v42 = vadd.f32 %v2743_v16, %v989_v45  ;;  %v1101_v16 = vld [vmem:[#allocation3 + $0x68] sm:$0xff] (%p850_p5)  ;;  %v1078_v63 = vld [vmem:[#allocation2 + $0x18] sm:$0xff] (%p850_p5) }
 0x25c   : > { %1067 = vst [vmem:[#allocation2 + $0x20] sm:$0xff] %v1054_v9  ;;  %1074 = vst [vmem:[#allocation2 + $0x40] sm:$0xff] %v1061_v11  ;;  %v1665_v44 = vpop.f32.mrf.mxu0  ;;  %852 = sbr.rel (!%p850_p5) target bundleno = 352 (0x160), region = 61  ;;  %1689 = vmatpush3.msra.mxu0 (%p850_p5), %v1101_v16  ;;  %1805 = vmatpush3.msra.mxu1 (%p850_p5), %v1101_v16  ;;  %v1085_v48 = vld [vmem:[#allocation2 + $0x10] sm:$0xff] (%p850_p5) }
 0x25d   : > { %vm1029_vm13 = vcmp.ge.f32.partialorder %v990_v42, 0.0  ;;  %v1042_v56 = vmul.f32 0.01, %v990_v42  ;;  %1690 = vmatprep.subr.mxu0 (%p850_p5), %v2883_v27  ;;  %1790 = vmatprep.subr.mxu1 (%p850_p5), %v2883_v27 }
 0x25e   :  { %1691 = vmatpush3.msra.mxu0 (%p850_p5), %v1100_v28  ;;  %1806 = vmatpush3.msra.mxu1 (%p850_p5), %v1100_v28 }
 0x25f   : > { %v1055_v58 = vsel %vm1029_vm13, %v990_v42, %v1042_v56  ;;  %1692 = vmatprep.subr.mxu0 (%p850_p5), %v2883_v27  ;;  %1791 = vmatprep.subr.mxu1 (%p850_p5), %v2883_v27  ;;  %v1079_v0 = vld [vmem:[#allocation2 + $0x50] sm:$0xff] (%p850_p5)  ;;  %v1086_v2 = vld [vmem:[#allocation2 + $0x60] sm:$0xff] (%p850_p5) }
 0x260   : > { %1068 = vst [vmem:[#allocation2 + $0x8] sm:$0xff] %v1055_v58  ;;  %1693 = vmatpush3.msra.mxu0 (%p850_p5), %v1099_v50  ;;  %1807 = vmatpush3.msra.mxu1 (%p850_p5), %v1099_v50 }
 0x261   :  { %1694 = vmatprep.subr.mxu0 %v2883_v27  ;;  %1792 = vmatprep.subr.mxu1 %v2883_v27 }
 0x262   :  { %1695 = vmatpush3.msra.mxu0 %v1098_v52  ;;  %1808 = vmatpush3.msra.mxu1 %v1098_v52 }
 0x263   :  { %1696 = vmatprep.subr.mxu0 %v2883_v27  ;;  %1793 = vmatprep.subr.mxu1 %v2883_v27  ;;  %v1080_v19 = vld [vmem:[#allocation2 + $0x20] sm:$0xff] }
 0x264   :  { %1697 = vmatpush3.msra.mxu0 %v1097_v59  ;;  %1809 = vmatpush3.msra.mxu1 %v1097_v59  ;;  %v1087_v35 = vld [vmem:[#allocation2 + $0x40] sm:$0xff] }
 0x265   :  { %1698 = vmatprep.subr.mxu0 %v2883_v27  ;;  %1794 = vmatprep.subr.mxu1 %v2883_v27 }
 0x266   :  { %1699 = vmatpush3.msra.mxu0 %v1096_v49  ;;  %1810 = vmatpush3.msra.mxu1 %v1096_v49 }
 0x267   :  { %1700 = vmatprep.subr.mxu0 %v2883_v27  ;;  %1795 = vmatprep.subr.mxu1 %v2883_v27  ;;  %v1081_v37 = vld [vmem:[#allocation2 + $0x8] sm:$0xff] }
 0x268   :  { %1701 = vmatpush3.msra.mxu0 %v1095_v13  ;;  %1811 = vmatpush3.msra.mxu1 %v1095_v13 }
 0x269   :  { %1702 = vmatprep.subr.mxu0 %v2883_v27  ;;  %1796 = vmatprep.subr.mxu1 %v2883_v27 }
 0x26a   :  { %1703 = vmatpush3.msra.mxu0 %v1094_v15  ;;  %1812 = vmatpush3.msra.mxu1 %v1094_v15 }
 0x26b   :  { %1704 = vmatprep.subr.mxu0 %v2883_v27  ;;  %1797 = vmatprep.subr.mxu1 %v2883_v27 }
 0x26c   :  { %1705 = vmatpush3.msra.mxu0 %v1093_v14  ;;  %1813 = vmatpush3.msra.mxu1 %v1093_v14 }
 0x26d   :  { %1706 = vmatprep.subr.mxu0 %v2883_v27  ;;  %1798 = vmatprep.subr.mxu1 %v2883_v27 }
 0x26e   :  { %1707 = vmatpush3.msra.mxu0 %v1092_v17  ;;  %1814 = vmatpush3.msra.mxu1 %v1092_v17 }
 0x26f   :  { %1708 = vmatprep.subr.mxu0 %v2883_v27  ;;  %1799 = vmatprep.subr.mxu1 %v2883_v27 }
 0x270   :  { %1709 = vmatpush3.msra.mxu0 %v1091_v55  ;;  %1815 = vmatpush3.msra.mxu1 %v1091_v55 }
 0x271   :  { %1710 = vmatprep.subr.mxu0 %v2883_v27  ;;  %1800 = vmatprep.subr.mxu1 %v2883_v27 }
 0x272   :  { %1711 = vmatpush3.msra.mxu0 %v1090_v30  ;;  %1816 = vmatpush3.msra.mxu1 %v1090_v30 }
 0x273   :  { %1712 = vmatprep.subr.mxu0 %v2883_v27  ;;  %1801 = vmatprep.subr.mxu1 %v2883_v27 }
 0x274   :  { %1713 = vmatpush3.msra.mxu0 %v1089_v32  ;;  %1817 = vmatpush3.msra.mxu1 %v1089_v32 }
 0x275   :  { %1714 = vmatprep.subr.mxu0 %v2883_v27  ;;  %1802 = vmatprep.subr.mxu1 %v2883_v27 }
 0x276   :  { %1715 = vmatpush3.msra.mxu0 %v1088_v31  ;;  %1818 = vmatpush3.msra.mxu1 %v1088_v31 }
 0x277   :  { %1717 = vmatmul.mubr.f32.vlgmr.msra.gmra.mxu0 %v1075_v33  ;;  %1738 = vmatmul.mubr.f32.vlgmr.msra.gmra.mxu1 %v1082_v47 }
 0x278   :  { %1719 = vmatprep.mubr.msk.f32.mxu0 %vm1868_vm0, %v2883_v27  ;;  %1740 = vmatprep.mubr.msk.f32.mxu1 %vm1868_vm0, %v2883_v27 }
 0x27b   :  { %1720 = vmatmul.mubr.f32.gmra.mxu0 %v1076_v57  ;;  %1741 = vmatmul.mubr.f32.gmra.mxu1 %v1083_v60 }
 0x27c   :  { %1722 = vmatprep.mubr.msk.f32.mxu0 %vm1868_vm0, %v2883_v27  ;;  %1743 = vmatprep.mubr.msk.f32.mxu1 %vm1868_vm0, %v2883_v27 }
 0x27f   :  { %1723 = vmatmul.mubr.f32.gmra.mxu0 %v1077_v61  ;;  %1744 = vmatmul.mubr.f32.gmra.mxu1 %v1084_v62 }
 0x280   :  { %1725 = vmatprep.mubr.msk.f32.mxu0 %vm1868_vm0, %v2883_v27  ;;  %1746 = vmatprep.mubr.msk.f32.mxu1 %vm1868_vm0, %v2883_v27 }
 0x283   :  { %1726 = vmatmul.mubr.f32.gmra.mxu0 %v1078_v63  ;;  %1747 = vmatmul.mubr.f32.gmra.mxu1 %v1085_v48 }
 0x284   :  { %1728 = vmatprep.mubr.msk.f32.mxu0 %vm1868_vm0, %v2883_v27  ;;  %1749 = vmatprep.mubr.msk.f32.mxu1 %vm1868_vm0, %v2883_v27 }
 0x287   :  { %1729 = vmatmul.mubr.f32.gmra.mxu0 %v1079_v0  ;;  %1750 = vmatmul.mubr.f32.gmra.mxu1 %v1086_v2 }
 0x288   :  { %1731 = vmatprep.mubr.msk.f32.mxu0 %vm1868_vm0, %v2883_v27  ;;  %1752 = vmatprep.mubr.msk.f32.mxu1 %vm1868_vm0, %v2883_v27 }
 0x28b   :  { %1732 = vmatmul.mubr.f32.gmra.mxu0 %v1080_v19  ;;  %1753 = vmatmul.mubr.f32.gmra.mxu1 %v1087_v35 }
 0x28c   :  { %1734 = vmatprep.mubr.msk.f32.mxu0 %vm1868_vm0, %v2883_v27 }
 0x28f   :  { %1735 = vmatmul.mubr.f32.gmra.mxu0 %v1081_v37 }
 0x337   :  { %v1177_v36 = vpop.f32.mrf.mxu0  ;;  %v1212_v20 = vpop.f32.mrf.mxu1 }
 0x338   :  { %v1178_v21 = vadd.f32 %v1283_v34, %v1177_v36  ;;  %v1213_v4 = vadd.f32 %v1283_v34, %v1212_v20 }
 0x339   :  { %v1718_v18 = vpop.f32.mrf.mxu0  ;;  %v1739_v1 = vpop.f32.mrf.mxu1 }
 0x33a   :  { %1241 = vst [vmem:[%s2868_s7] sm:$0xff] %v1178_v21  ;;  %1248 = vst [vmem:[%s2868_s7 + $0x38] sm:$0xff] %v1213_v4 }
 0x33b   :  { %v1182_v46 = vpop.f32.mrf.mxu0  ;;  %v1217_v7 = vpop.f32.mrf.mxu1 }
 0x33c   :  { %v1183_v3 = vadd.f32 %v1283_v34, %v1182_v46  ;;  %v1218_v38 = vadd.f32 %v1283_v34, %v1217_v7 }
 0x33d   :  { %v1721_v5 = vpop.f32.mrf.mxu0  ;;  %v1742_v39 = vpop.f32.mrf.mxu1 }
 0x33e   :  { %1242 = vst [vmem:[%s2868_s7 + $0x8] sm:$0xff] %v1183_v3  ;;  %1249 = vst [vmem:[%s2868_s7 + $0x40] sm:$0xff] %v1218_v38 }
 0x33f   :  { %v1187_v40 = vpop.f32.mrf.mxu0  ;;  %v1222_v6 = vpop.f32.mrf.mxu1 }
 0x340   :  { %v1188_v41 = vadd.f32 %v1283_v34, %v1187_v40  ;;  %v1223_v8 = vadd.f32 %v1283_v34, %v1222_v6 }
 0x341   :  { %v1724_v51 = vpop.f32.mrf.mxu0  ;;  %v1745_v24 = vpop.f32.mrf.mxu1 }
 0x342   :  { %1243 = vst [vmem:[%s2868_s7 + $0x10] sm:$0xff] %v1188_v41  ;;  %1250 = vst [vmem:[%s2868_s7 + $0x48] sm:$0xff] %v1223_v8 }
 0x343   :  { %v1192_v22 = vpop.f32.mrf.mxu0  ;;  %v1227_v10 = vpop.f32.mrf.mxu1 }
 0x344   :  { %v1193_v23 = vadd.f32 %v1283_v34, %v1192_v22  ;;  %v1228_v12 = vadd.f32 %v1283_v34, %v1227_v10 }
 0x345   :  { %v1727_v25 = vpop.f32.mrf.mxu0  ;;  %v1748_v54 = vpop.f32.mrf.mxu1 }
 0x346   :  { %1244 = vst [vmem:[%s2868_s7 + $0x18] sm:$0xff] %v1193_v23  ;;  %1251 = vst [vmem:[%s2868_s7 + $0x50] sm:$0xff] %v1228_v12 }
 0x347   :  { %v1197_v53 = vpop.f32.mrf.mxu0  ;;  %v1232_v9 = vpop.f32.mrf.mxu1 }
 0x348   :  { %v1198_v43 = vadd.f32 %v1283_v34, %v1197_v53  ;;  %v1233_v11 = vadd.f32 %v1283_v34, %v1232_v9 }
 0x349   :  { %v1730_v45 = vpop.f32.mrf.mxu0  ;;  %v1751_v44 = vpop.f32.mrf.mxu1 }
 0x34a   :  { %1245 = vst [vmem:[%s2868_s7 + $0x20] sm:$0xff] %v1198_v43  ;;  %1252 = vst [vmem:[%s2868_s7 + $0x58] sm:$0xff] %v1233_v11 }
 0x34b   :  { %v1202_v42 = vpop.f32.mrf.mxu0  ;;  %v1237_v27 = vpop.f32.mrf.mxu1 }
 0x34c   :  { %v1203_v56 = vadd.f32 %v1283_v34, %v1202_v42  ;;  %v1238_v29 = vadd.f32 %v1283_v34, %v1237_v27 }
 0x34d   :  { %v1733_v58 = vpop.f32.mrf.mxu0  ;;  %v1754_v16 = vpop.f32.mrf.mxu1 }
 0x34e   :  { %1246 = vst [vmem:[%s2868_s7 + $0x28] sm:$0xff] %v1203_v56  ;;  %1253 = vst [vmem:[%s2868_s7 + $0x60] sm:$0xff] %v1238_v29 }
 0x34f   :  { %v1207_v26 = vpop.f32.mrf.mxu0 }
 0x350   :  { %v1208_v28 = vadd.f32 %v1283_v34, %v1207_v26 }
 0x351   :  { %v1736_v50 = vpop.f32.mrf.mxu0 }
 0x352   :  { %1247 = vst [vmem:[%s2868_s7 + $0x30] sm:$0xff] %v1208_v28 }
 0x353   :  { %1258 = vsyncpa [#allocation4], 1 }

</bundles_post_ra>
